<compile_context>
chip_gen: v7x
topology: tpu7x:2x2x1
jax: 0.10.0
libtpu: 0.0.40
codegen_flags: <defaults>
</compile_context>

<pallas_src>
import functools

import jax
import jax.numpy as jnp
from jax import lax
from jax.experimental import pallas as pl
from jax.experimental.pallas import tpu as pltpu

LANE = 128


def _round_up(v, m):
    return (v + m - 1) // m * m


def _vmem_budget_bytes():
    try:
        cap = pltpu.get_tpu_info().vmem_capacity_bytes
    except Exception:
        cap = 64 * 1024 * 1024  # conservative fallback (v7x per-TC VMEM)
    return int(0.7 * cap)


def _build_adj(edge_index, n, alpha):
    """Dense D^-1/2 (A + I) D^-1/2, scaled by (1 - alpha), in bf16 (glue)."""
    row, col = edge_index[0], edge_index[1]
    loops = jnp.arange(n, dtype=edge_index.dtype)
    row = jnp.concatenate([row, loops])
    col = jnp.concatenate([col, loops])
    ones = jnp.ones(row.shape[0], jnp.float32)
    deg = jnp.zeros((n,), jnp.float32).at[row].add(ones)
    dinv = jnp.where(deg > 0, lax.rsqrt(deg), 0.0)
    vals = dinv[row] * dinv[col] * (1.0 - alpha)  # fold (1 - alpha) into A-hat
    adj = jnp.zeros((n, n), jnp.float32).at[row, col].add(vals)
    return adj.astype(jnp.bfloat16)


# --------------------------------------------------------------------------
# Path A: everything VMEM-resident, K-step propagation unrolled in-kernel.
# --------------------------------------------------------------------------
def _resident_kernel(x_ref, w1_ref, b1_ref, w2_ref, b2_ref, adj_ref, o_ref,
                     *, K, alpha):
    # MLP: relu(x @ W1 + b1) @ W2 + b2  (elementwise stays f32).
    h = jnp.dot(x_ref[...], w1_ref[...],
                preferred_element_type=jnp.float32) + b1_ref[...]
    h = jnp.maximum(h, 0.0)
    h = jnp.dot(h, w2_ref[...],
                preferred_element_type=jnp.float32) + b2_ref[...]

    ah = alpha * h            # hoisted out of the K loop
    adj = adj_ref[...]        # bf16, (1 - alpha) already folded in

    # Fully unrolled propagation: z <- adj_scaled @ z + alpha * h.
    z = h
    for _ in range(K):
        z = jnp.dot(adj, z.astype(jnp.bfloat16),
                    preferred_element_type=jnp.float32) + ah
    o_ref[...] = z.astype(o_ref.dtype)


def _appnp_resident(x, adj, w1p, b1p, w2p, b2p, K, alpha, vmem_limit):
    n, in_c = x.shape
    hpad, opad = w1p.shape[1], w2p.shape[1]
    flops = 2 * n * in_c * hpad + 2 * n * hpad * opad + K * 2 * n * n * opad
    bytes_acc = (x.size + w1p.size + b1p.size + w2p.size + b2p.size) * 4 \
        + adj.size * 2 + n * opad * 4
    kernel = functools.partial(_resident_kernel, K=K, alpha=alpha)
    return pl.pallas_call(
        kernel,
        out_shape=jax.ShapeDtypeStruct((n, opad), jnp.float32),
        in_specs=[pl.BlockSpec(memory_space=pltpu.VMEM)] * 6,
        out_specs=pl.BlockSpec(memory_space=pltpu.VMEM),
        compiler_params=pltpu.CompilerParams(vmem_limit_bytes=vmem_limit),
        cost_estimate=pl.CostEstimate(flops=int(flops), transcendentals=0,
                                      bytes_accessed=int(bytes_acc)),
    )(x, w1p, b1p, w2p, b2p, adj)


# --------------------------------------------------------------------------
# Path B: adj row tiles streamed from HBM, grid = (K+1, row_tiles),
#         z held in VMEM scratch (bf16 operand copy + f32 staging).
# --------------------------------------------------------------------------
def _tiled_kernel(x_ref, w1_ref, b1_ref, w2_ref, b2_ref, adj_ref, o_ref,
                  z_ref, znew_ref, ah_ref, *, K, alpha, tm):
    k = pl.program_id(0)          # 0: MLP / init,  1..K: propagation steps
    i = pl.program_id(1)          # row tile
    rows = pl.ds(pl.multiple_of(i * tm, tm), tm)

    @pl.when(k == 0)
    def _():
        h = jnp.dot(x_ref[...], w1_ref[...],
                    preferred_element_type=jnp.float32) + b1_ref[...]
        h = jnp.maximum(h, 0.0)
        h = jnp.dot(h, w2_ref[...],
                    preferred_element_type=jnp.float32) + b2_ref[...]
        z_ref[rows, :] = h.astype(z_ref.dtype)      # bf16 matmul operand
        ah_ref[rows, :] = alpha * h                 # hoisted alpha * h (f32)
        o_ref[...] = h

    @pl.when(k > 0)
    def _():
        zt = jnp.dot(adj_ref[...], z_ref[...],
                     preferred_element_type=jnp.float32) + ah_ref[rows, :]
        znew_ref[rows, :] = zt
        o_ref[...] = zt

        # After the last row tile of this step, publish z_new -> z so the next
        # propagation step reads a complete z_k (grid axes are sequential).
        @pl.when(i == pl.num_programs(1) - 1)
        def _():
            z_ref[...] = znew_ref[...].astype(z_ref.dtype)


def _appnp_tiled(x, adj, w1p, b1p, w2p, b2p, K, alpha, tm, vmem_limit):
    n, in_c = x.shape
    hpad, opad = w1p.shape[1], w2p.shape[1]
    npad = _round_up(n, tm)
    if npad != n:
        x = jnp.zeros((npad, in_c), x.dtype).at[:n].set(x)
        adj = jnp.zeros((npad, npad), adj.dtype).at[:n, :n].set(adj)
    n_tiles = npad // tm

    flops = 2 * npad * in_c * hpad + 2 * npad * hpad * opad \
        + K * 2 * npad * npad * opad
    bytes_acc = (x.size + w1p.size + b1p.size + w2p.size + b2p.size) * 4 \
        + (K + 1) * adj.size * 2 + (K + 1) * npad * opad * 4

    kernel = functools.partial(_tiled_kernel, K=K, alpha=alpha, tm=tm)
    grid_spec = pltpu.PrefetchScalarGridSpec(
        num_scalar_prefetch=0,
        grid=(K + 1, n_tiles),
        in_specs=[
            pl.BlockSpec((tm, in_c), lambda k, i: (i, 0)),    # x row tile
            pl.BlockSpec((in_c, hpad), lambda k, i: (0, 0)),  # W1 (resident)
            pl.BlockSpec((1, hpad), lambda k, i: (0, 0)),     # b1
            pl.BlockSpec((hpad, opad), lambda k, i: (0, 0)),  # W2
            pl.BlockSpec((1, opad), lambda k, i: (0, 0)),     # b2
            pl.BlockSpec((tm, npad), lambda k, i: (i, 0)),    # adj row tile
        ],
        out_specs=pl.BlockSpec((tm, opad), lambda k, i: (i, 0)),
        scratch_shapes=[
            pltpu.VMEM((npad, opad), jnp.bfloat16),  # z_k     (matmul operand)
            pltpu.VMEM((npad, opad), jnp.float32),   # z_{k+1} (f32 staging)
            pltpu.VMEM((npad, opad), jnp.float32),   # alpha * h
        ],
    )
    out = pl.pallas_call(
        kernel,
        out_shape=jax.ShapeDtypeStruct((npad, opad), jnp.float32),
        grid_spec=grid_spec,
        compiler_params=pltpu.CompilerParams(
            dimension_semantics=("arbitrary", "arbitrary"),
            vmem_limit_bytes=vmem_limit),
        cost_estimate=pl.CostEstimate(flops=int(flops), transcendentals=0,
                                      bytes_accessed=int(bytes_acc)),
    )(x, w1p, b1p, w2p, b2p, adj)
    return out[:n]


# --------------------------------------------------------------------------
# Public wrapper.
# --------------------------------------------------------------------------
def appnp_net_forward(x, edge_index, params, *, K=10, alpha=0.1,
                      force_tiled=False, tm=256):
    """x: [N, in_c] f32; edge_index: [2, E] int32; params = (W1, b1, W2, b2)
    with weights pre-transposed for y = x @ W + b."""
    n, in_c = x.shape
    w1, b1, w2, b2 = params
    hid, out_c = w1.shape[1], w2.shape[1]

    # Lane-dense padding of hidden / output widths (zero pad -> exact result).
    hpad = _round_up(hid, LANE)
    opad = _round_up(out_c, LANE)
    w1p = jnp.zeros((in_c, hpad), jnp.float32).at[:, :hid].set(w1)
    b1p = jnp.zeros((1, hpad), jnp.float32).at[:, :hid].set(b1.reshape(1, hid))
    w2p = jnp.zeros((hpad, opad), jnp.float32).at[:hid, :out_c].set(w2)
    b2p = jnp.zeros((1, opad), jnp.float32).at[:, :out_c].set(b2.reshape(1, out_c))

    adj = _build_adj(edge_index, n, alpha)   # bf16, (1 - alpha) folded in

    vmem_limit = _vmem_budget_bytes()
    # Rough resident-path VMEM estimate: bf16 adj + f32 activations/temps.
    resident_bytes = 2 * n * n + 4 * n * (in_c + 4 * opad) \
        + 4 * (w1p.size + b1p.size + w2p.size + b2p.size)
    use_tiled = force_tiled or int(1.5 * resident_bytes) > vmem_limit

    if use_tiled:
        tm_eff = max(16, min(tm, _round_up(n, 16) // 2 or 16))
        tm_eff = max(16, tm_eff - tm_eff % 16)
        out = _appnp_tiled(x, adj, w1p, b1p, w2p, b2p, K, alpha, tm_eff,
                           vmem_limit)
    else:
        out = _appnp_resident(x, adj, w1p, b1p, w2p, b2p, K, alpha, vmem_limit)
    return out[:, :out_c]


def init_params(key, in_channels, hidden_channels, out_channels):
    k1, k2, k3, k4 = jax.random.split(key, 4)
    s1 = 1.0 / jnp.sqrt(in_channels)
    s2 = 1.0 / jnp.sqrt(hidden_channels)
    w1 = jax.random.uniform(k1, (in_channels, hidden_channels), jnp.float32, -s1, s1)
    b1 = jax.random.uniform(k2, (1, hidden_channels), jnp.float32, -s1, s1)
    w2 = jax.random.uniform(k3, (hidden_channels, out_channels), jnp.float32, -s2, s2)
    b2 = jax.random.uniform(k4, (1, out_channels), jnp.float32, -s2, s2)
    return w1, b1, w2, b2


def appnp_reference(x, edge_index, params, K=10, alpha=0.1):
    """Pure-JAX f32 reference (same semantics, no bf16 cast)."""
    n = x.shape[0]
    w1, b1, w2, b2 = params
    h = jnp.maximum(x @ w1 + b1.reshape(1, -1), 0.0) @ w2 + b2.reshape(1, -1)
    row, col = edge_index[0], edge_index[1]
    loops = jnp.arange(n, dtype=edge_index.dtype)
    row = jnp.concatenate([row, loops])
    col = jnp.concatenate([col, loops])
    deg = jnp.zeros((n,), jnp.float32).at[row].add(jnp.ones(row.shape[0]))
    dinv = jnp.where(deg > 0, lax.rsqrt(deg), 0.0)
    adj = jnp.zeros((n, n), jnp.float32).at[row, col].add(dinv[row] * dinv[col])
    z = h
    for _ in range(K):
        z = (1.0 - alpha) * (adj @ z) + alpha * h
    return z


if __name__ == "__main__":
    key = jax.random.PRNGKey(0)
    N, IN_C, HID_C, OUT_C, E = 128, 32, 32, 16, 512

    kx, ke, kp = jax.random.split(key, 3)
    x = jax.random.normal(kx, (N, IN_C), jnp.float32)
    edge_index = jax.random.randint(ke, (2, E), 0, N, dtype=jnp.int32)
    params = init_params(kp, IN_C, HID_C, OUT_C)

    # Path A: VMEM-resident (adj fits on-chip at this size).
    out = appnp_net_forward(x, edge_index, params, K=10, alpha=0.1)
    out = jax.block_until_ready(out)
    assert out.shape == (N, OUT_C)

    # Path B: row-tiled streaming path, exercised explicitly at small size.
    out_tiled = appnp_net_forward(x, edge_index, params, K=10, alpha=0.1,
                                  force_tiled=True, tm=64)
    out_tiled = jax.block_until_ready(out_tiled)
    assert out_tiled.shape == (N, OUT_C)

    # Verify against the f32 reference (bf16 A-hat => loose tolerance).
    ref = appnp_reference(x, edge_index, params, K=10, alpha=0.1)
    scale = jnp.max(jnp.abs(ref)) + 1e-6
    assert float(jnp.max(jnp.abs(out - ref)) / scale) < 5e-2
    assert float(jnp.max(jnp.abs(out_tiled - ref)) / scale) < 5e-2

    print("KERNEL_OK")
</pallas_src>

<mosaic_0001>
module attributes {stable_mosaic.version = 11 : i64} {
  func.func @_resident_kernel(%arg0: memref<128x32xf32, #tpu.memory_space<vmem>>, %arg1: memref<32x128xf32, #tpu.memory_space<vmem>>, %arg2: memref<1x128xf32, #tpu.memory_space<vmem>>, %arg3: memref<128x128xf32, #tpu.memory_space<vmem>>, %arg4: memref<1x128xf32, #tpu.memory_space<vmem>>, %arg5: memref<128x128xbf16, #tpu.memory_space<vmem>>, %arg6: memref<128x128xf32, #tpu.memory_space<vmem>>) attributes {dimension_semantics = [], scalar_prefetch = 0 : i64, scratch_operands = 0 : i64, tpu.core_type = #tpu.core_type<tc>} {
    %c0 = arith.constant 0 : index
    %c0_0 = arith.constant 0 : index
    %0 = vector.load %arg0[%c0, %c0_0] : memref<128x32xf32, #tpu.memory_space<vmem>>, vector<128x32xf32>
    %c0_1 = arith.constant 0 : index
    %c0_2 = arith.constant 0 : index
    %1 = vector.load %arg1[%c0_1, %c0_2] : memref<32x128xf32, #tpu.memory_space<vmem>>, vector<32x128xf32>
    %cst = arith.constant dense<0.000000e+00> : vector<128x128xf32>
    %2 = tpu.matmul %0, %1, %cst {dimension_numbers = #tpu.dot_dimension_numbers<[1], [0], [0], [1], [0, 0, 1, 1], [], []>} : vector<128x32xf32>, vector<32x128xf32>, vector<128x128xf32> -> vector<128x128xf32>
    %c0_3 = arith.constant 0 : index
    %c0_4 = arith.constant 0 : index
    %3 = vector.load %arg2[%c0_3, %c0_4] : memref<1x128xf32, #tpu.memory_space<vmem>>, vector<1x128xf32>
    %4 = vector.broadcast %3 : vector<1x128xf32> to vector<128x128xf32>
    %5 = arith.addf %2, %4 : vector<128x128xf32>
    %cst_5 = arith.constant 0.000000e+00 : f32
    %6 = vector.broadcast %cst_5 : f32 to vector<128x128xf32>
    %7 = arith.maximumf %5, %6 : vector<128x128xf32>
    %c0_6 = arith.constant 0 : index
    %c0_7 = arith.constant 0 : index
    %8 = vector.load %arg3[%c0_6, %c0_7] : memref<128x128xf32, #tpu.memory_space<vmem>>, vector<128x128xf32>
    %cst_8 = arith.constant dense<0.000000e+00> : vector<128x128xf32>
    %9 = tpu.matmul %7, %8, %cst_8 {dimension_numbers = #tpu.dot_dimension_numbers<[1], [0], [0], [1], [0, 0, 1, 1], [], []>} : vector<128x128xf32>, vector<128x128xf32>, vector<128x128xf32> -> vector<128x128xf32>
    %c0_9 = arith.constant 0 : index
    %c0_10 = arith.constant 0 : index
    %10 = vector.load %arg4[%c0_9, %c0_10] : memref<1x128xf32, #tpu.memory_space<vmem>>, vector<1x128xf32>
    %11 = vector.broadcast %10 : vector<1x128xf32> to vector<128x128xf32>
    %12 = arith.addf %9, %11 : vector<128x128xf32>
    %cst_11 = arith.constant 1.000000e-01 : f32
    %13 = vector.broadcast %cst_11 : f32 to vector<128x128xf32>
    %14 = arith.mulf %13, %12 : vector<128x128xf32>
    %c0_12 = arith.constant 0 : index
    %c0_13 = arith.constant 0 : index
    %15 = vector.load %arg5[%c0_12, %c0_13] : memref<128x128xbf16, #tpu.memory_space<vmem>>, vector<128x128xbf16>
    %16 = arith.truncf %12 : vector<128x128xf32> to vector<128x128xbf16>
    %cst_14 = arith.constant dense<0.000000e+00> : vector<128x128xf32>
    %17 = tpu.matmul %15, %16, %cst_14 {dimension_numbers = #tpu.dot_dimension_numbers<[1], [0], [0], [1], [0, 0, 1, 1], [], []>} : vector<128x128xbf16>, vector<128x128xbf16>, vector<128x128xf32> -> vector<128x128xf32>
    %18 = arith.addf %17, %14 : vector<128x128xf32>
    %19 = arith.truncf %18 : vector<128x128xf32> to vector<128x128xbf16>
    %cst_15 = arith.constant dense<0.000000e+00> : vector<128x128xf32>
    %20 = tpu.matmul %15, %19, %cst_15 {dimension_numbers = #tpu.dot_dimension_numbers<[1], [0], [0], [1], [0, 0, 1, 1], [], []>} : vector<128x128xbf16>, vector<128x128xbf16>, vector<128x128xf32> -> vector<128x128xf32>
    %21 = arith.addf %20, %14 : vector<128x128xf32>
    %22 = arith.truncf %21 : vector<128x128xf32> to vector<128x128xbf16>
    %cst_16 = arith.constant dense<0.000000e+00> : vector<128x128xf32>
    %23 = tpu.matmul %15, %22, %cst_16 {dimension_numbers = #tpu.dot_dimension_numbers<[1], [0], [0], [1], [0, 0, 1, 1], [], []>} : vector<128x128xbf16>, vector<128x128xbf16>, vector<128x128xf32> -> vector<128x128xf32>
    %24 = arith.addf %23, %14 : vector<128x128xf32>
    %25 = arith.truncf %24 : vector<128x128xf32> to vector<128x128xbf16>
    %cst_17 = arith.constant dense<0.000000e+00> : vector<128x128xf32>
    %26 = tpu.matmul %15, %25, %cst_17 {dimension_numbers = #tpu.dot_dimension_numbers<[1], [0], [0], [1], [0, 0, 1, 1], [], []>} : vector<128x128xbf16>, vector<128x128xbf16>, vector<128x128xf32> -> vector<128x128xf32>
    %27 = arith.addf %26, %14 : vector<128x128xf32>
    %28 = arith.truncf %27 : vector<128x128xf32> to vector<128x128xbf16>
    %cst_18 = arith.constant dense<0.000000e+00> : vector<128x128xf32>
    %29 = tpu.matmul %15, %28, %cst_18 {dimension_numbers = #tpu.dot_dimension_numbers<[1], [0], [0], [1], [0, 0, 1, 1], [], []>} : vector<128x128xbf16>, vector<128x128xbf16>, vector<128x128xf32> -> vector<128x128xf32>
    %30 = arith.addf %29, %14 : vector<128x128xf32>
    %31 = arith.truncf %30 : vector<128x128xf32> to vector<128x128xbf16>
    %cst_19 = arith.constant dense<0.000000e+00> : vector<128x128xf32>
    %32 = tpu.matmul %15, %31, %cst_19 {dimension_numbers = #tpu.dot_dimension_numbers<[1], [0], [0], [1], [0, 0, 1, 1], [], []>} : vector<128x128xbf16>, vector<128x128xbf16>, vector<128x128xf32> -> vector<128x128xf32>
    %33 = arith.addf %32, %14 : vector<128x128xf32>
    %34 = arith.truncf %33 : vector<128x128xf32> to vector<128x128xbf16>
    %cst_20 = arith.constant dense<0.000000e+00> : vector<128x128xf32>
    %35 = tpu.matmul %15, %34, %cst_20 {dimension_numbers = #tpu.dot_dimension_numbers<[1], [0], [0], [1], [0, 0, 1, 1], [], []>} : vector<128x128xbf16>, vector<128x128xbf16>, vector<128x128xf32> -> vector<128x128xf32>
    %36 = arith.addf %35, %14 : vector<128x128xf32>
    %37 = arith.truncf %36 : vector<128x128xf32> to vector<128x128xbf16>
    %cst_21 = arith.constant dense<0.000000e+00> : vector<128x128xf32>
    %38 = tpu.matmul %15, %37, %cst_21 {dimension_numbers = #tpu.dot_dimension_numbers<[1], [0], [0], [1], [0, 0, 1, 1], [], []>} : vector<128x128xbf16>, vector<128x128xbf16>, vector<128x128xf32> -> vector<128x128xf32>
    %39 = arith.addf %38, %14 : vector<128x128xf32>
    %40 = arith.truncf %39 : vector<128x128xf32> to vector<128x128xbf16>
    %cst_22 = arith.constant dense<0.000000e+00> : vector<128x128xf32>
    %41 = tpu.matmul %15, %40, %cst_22 {dimension_numbers = #tpu.dot_dimension_numbers<[1], [0], [0], [1], [0, 0, 1, 1], [], []>} : vector<128x128xbf16>, vector<128x128xbf16>, vector<128x128xf32> -> vector<128x128xf32>
    %42 = arith.addf %41, %14 : vector<128x128xf32>
    %43 = arith.truncf %42 : vector<128x128xf32> to vector<128x128xbf16>
    %cst_23 = arith.constant dense<0.000000e+00> : vector<128x128xf32>
    %44 = tpu.matmul %15, %43, %cst_23 {dimension_numbers = #tpu.dot_dimension_numbers<[1], [0], [0], [1], [0, 0, 1, 1], [], []>} : vector<128x128xbf16>, vector<128x128xbf16>, vector<128x128xf32> -> vector<128x128xf32>
    %45 = arith.addf %44, %14 : vector<128x128xf32>
    %c0_24 = arith.constant 0 : index
    %c0_25 = arith.constant 0 : index
    %46 = vector.load %arg6[%c0_24, %c0_25] : memref<128x128xf32, #tpu.memory_space<vmem>>, vector<128x128xf32>
    tpu.vector_store %arg6[%c0_24, %c0_25], %45 {strides = array<i32>} : memref<128x128xf32, #tpu.memory_space<vmem>>, vector<128x128xf32>,
    return
  }
}

</mosaic_0001>

<bundles_post_ra>
// kernel: tpu_custom_call.1
= control target key start
LH: loop header
LB: loop body
LE: loop exit
PB: predicated region body
PF: predicated region fallthrough
CT: control target
= control target key end

     0   :  { %11 = vsyncpa [#allocation3], 0  ;;  %s2936_s0 = inlined_call_operand.vmem [shape: f32[128,32], index: 0, kind: input, shape index: {}]   ;;  %s2937_s1 = inlined_call_operand.vmem [shape: f32[32,128], index: 1, kind: input, shape index: {}]   ;;  %s2938_s2 = inlined_call_operand.vmem [shape: f32[1,128], index: 2, kind: input, shape index: {}]   ;;  %s2939_s3 = inlined_call_operand.vmem [shape: f32[128,128], index: 3, kind: input, shape index: {}]   ;;  %s2940_s4 = inlined_call_operand.vmem [shape: f32[1,128], index: 4, kind: input, shape index: {}]   ;;  %s2941_s5 = inlined_call_operand.hbm [shape: bf16[128,128], index: 5, kind: input, shape index: {}]   ;;  %s2942_s6 = inlined_call_operand.hbm [shape: f32[128,128], index: 6, kind: output, shape index: {}]  }
   0x1   :  { %12 = vsyncpa [#allocation4], 0  ;;  %s2379_s21 = smov [#allocation2]   ;;  %s2331_s25 = scalar_lea.hbm %s2941_s5, 1024 }
   0x2   :  { %s28_s22 = sshll.u32 %s2379_s21, 4  ;;  %p2332_p0 = scmp.ne.s32.totalorder %s2941_s5, %s2331_s25  ;;  %s29_s22 = int_to_ptr.vmem [resolvable:$true] %s28_s22 }
   0x3   :  { %p2335_p1 = scmp.lt.u32.totalorder %s2331_s25, %s2941_s5 }
   0x5   :  { %p2337_p2 = pnand %p2335_p1, %p2332_p0 }
   0x7   :  { %2340 = shalt.err (!%p2337_p2)
}
   0x8   :  { %s2341_s30 = scalar_lea.vmem %s29_s22, 1024  ;;  %p2346_p4 = scmp.lt.s32.totalorder %s29_s22, %s29_s22 }
   0x9   :  { %p2342_p3 = scmp.ne.s32.totalorder %s29_s22, %s2341_s30  ;;  %p2347_p5 = scmp.lt.s32.totalorder %s2341_s30, %s2341_s30 }
   0xb   :  { %p2348_p6 = por %p2347_p5, %p2346_p4 }
   0xd   :  { %p2349_p7 = pnand %p2348_p6, %p2342_p3 }
   0xf   :  { %2352 = shalt.err (!%p2349_p7)
}
  0x10   :  { %s2380_s7 = smov 64   ;;  %s2381_s8 = smov 4  }
  0x11   :  { %34 = dma.hbm_to_vmem [thread:$0]  %s2941_s5, 1024, %s29_s22, [#allocation3], %s2380_s7, %s2380_s7, %s2381_s8  }
  0x12   :  { %2375 = dma.done.wait [#allocation3], 1024  }
  0x13   :  { %2376 = vsyncadd [#allocation3], 4294966272  ;;  %vm66_vm0 = vcmask 261120   ;;  %v55_v0 = vld [vmem:[%s2937_s1] sm:$0xff]  ;;  %v56_v1 = vld [vmem:[%s2937_s1 + $0x8] sm:$0xff] }
  0x14   :  { %v57_v2 = vld [vmem:[%s2937_s1 + $0x10] sm:$0xff]  ;;  %v2253_v3 = vpack.c.bf16 %v56_v1, %v55_v0  ;;  %v58_v4 = vld [vmem:[%s2937_s1 + $0x18] sm:$0xff]  ;;  %v39_v5 = vld [vmem:[%s2936_s0] sm:$0xff] }
  0x15   :  { %v2257_v6 = vpack.c.bf16 %v58_v4, %v57_v2  ;;  %1853 = vmatprep.mubr.msk.f32.mxu0 %vm66_vm0, %v39_v5  ;;  %v276_v7 = vld [vmem:[%s2939_s3] sm:$0xff]  ;;  %v277_v8 = vld [vmem:[%s2939_s3 + $0x8] sm:$0xff]  ;;  %v278_v9 = vld [vmem:[%s2939_s3 + $0x10] sm:$0xff] }
  0x16   :  { %2254 = vmatprep.subr.bf16.mxu0 %v2253_v3  ;;  %v279_v10 = vld [vmem:[%s2939_s3 + $0x18] sm:$0xff]  ;;  %v40_v11 = vld [vmem:[%s2936_s0 + $0x8] sm:$0xff]  ;;  %v2261_v12 = vpack.c.bf16 %v277_v8, %v276_v7  ;;  %v41_v14 = vld [vmem:[%s2936_s0 + $0x10] sm:$0xff] }
  0x17   :  { %2256 = vmatpush3.bf16.msra.mxu0 %v2253_v3  ;;  %v2265_v13 = vpack.c.bf16 %v279_v10, %v278_v9  ;;  %v280_v15 = vld [vmem:[%s2939_s3 + $0x20] sm:$0xff]  ;;  %v281_v16 = vld [vmem:[%s2939_s3 + $0x28] sm:$0xff]  ;;  %v42_v17 = vld [vmem:[%s2936_s0 + $0x18] sm:$0xff] }
  0x18   :  { %2258 = vmatprep.subr.bf16.mxu0 %v2257_v6  ;;  %2262 = vmatprep.subr.bf16.mxu1 %v2261_v12  ;;  %v43_v18 = vld [vmem:[%s2936_s0 + $0x20] sm:$0xff]  ;;  %v282_v19 = vld [vmem:[%s2939_s3 + $0x30] sm:$0xff]  ;;  %v283_v20 = vld [vmem:[%s2939_s3 + $0x38] sm:$0xff]  ;;  %v2269_v21 = vpack.c.bf16 %v281_v16, %v280_v15 }
  0x19   :  { %2264 = vmatpush3.bf16.msra.mxu1 %v2261_v12  ;;  %v44_v22 = vld [vmem:[%s2936_s0 + $0x28] sm:$0xff]  ;;  %v2273_v23 = vpack.c.bf16 %v283_v20, %v282_v19  ;;  %v45_v24 = vld [vmem:[%s2936_s0 + $0x30] sm:$0xff]  ;;  %v284_v25 = vld [vmem:[%s2939_s3 + $0x40] sm:$0xff] }
  0x1a   :  { %2266 = vmatprep.subr.bf16.mxu1 %v2265_v13  ;;  %v285_v26 = vld [vmem:[%s2939_s3 + $0x48] sm:$0xff]  ;;  %v46_v27 = vld [vmem:[%s2936_s0 + $0x38] sm:$0xff]  ;;  %v47_v29 = vld [vmem:[%s2936_s0 + $0x40] sm:$0xff] }
  0x1b   :  { %2260 = vmatpush3.bf16.msra.mxu0 %v2257_v6  ;;  %v2277_v28 = vpack.c.bf16 %v285_v26, %v284_v25  ;;  %v286_v30 = vld [vmem:[%s2939_s3 + $0x50] sm:$0xff]  ;;  %v287_v31 = vld [vmem:[%s2939_s3 + $0x58] sm:$0xff]  ;;  %v48_v32 = vld [vmem:[%s2936_s0 + $0x48] sm:$0xff] }
  0x1c   :  { %v2281_v33 = vpack.c.bf16 %v287_v31, %v286_v30  ;;  %v49_v34 = vld [vmem:[%s2936_s0 + $0x50] sm:$0xff]  ;;  %v288_v35 = vld [vmem:[%s2939_s3 + $0x60] sm:$0xff]  ;;  %v289_v36 = vld [vmem:[%s2939_s3 + $0x68] sm:$0xff] }
  0x1d   :  { %2268 = vmatpush3.bf16.msra.mxu1 %v2265_v13  ;;  %v50_v37 = vld [vmem:[%s2936_s0 + $0x58] sm:$0xff]  ;;  %v2285_v38 = vpack.c.bf16 %v289_v36, %v288_v35  ;;  %v51_v39 = vld [vmem:[%s2936_s0 + $0x60] sm:$0xff]  ;;  %v52_v40 = vld [vmem:[%s2936_s0 + $0x68] sm:$0xff] }
  0x1e   :  { %1854 = vmatmul.mubr.msk.f32.vlgmr.msra.gmra.mrb[0].mxu0 %vm66_vm0, %v40_v11  ;;  %2270 = vmatprep.subr.bf16.mxu1 %v2269_v21  ;;  %v53_v41 = vld [vmem:[%s2936_s0 + $0x70] sm:$0xff]  ;;  %v54_v42 = vld [vmem:[%s2936_s0 + $0x78] sm:$0xff]  ;;  %v1607_v46 = vld [vmem:[%s2938_s2] ss:$0 sm:$0xff] }
  0x1f   :  { %1856 = vmatprep.mubr.msk.f32.mxu0 %vm66_vm0, %v41_v14  ;;  %v290_v43 = vld [vmem:[%s2939_s3 + $0x70] sm:$0xff]  ;;  %v291_v44 = vld [vmem:[%s2939_s3 + $0x78] sm:$0xff]  ;;  %v2559_v31 = vld [vmem:[#allocation2] sm:$0xff]   ;;  %s2382_s3 = smov [#allocation5]  }
  0x20   :  { %v2289_v45 = vpack.c.bf16 %v291_v44, %v290_v43 }
  0x21   :  { %2272 = vmatpush3.bf16.msra.mxu1 %v2269_v21 }
  0x22   :  { %1857 = vmatmul.mubr.msk.f32.gmra.mrb[2].mxu0 %vm66_vm0, %v42_v17  ;;  %2274 = vmatprep.subr.bf16.mxu1 %v2273_v23 }
  0x23   :  { %1859 = vmatprep.mubr.msk.f32.mxu0 %vm66_vm0, %v43_v18 }
  0x25   :  { %2276 = vmatpush3.bf16.msra.mxu1 %v2273_v23 }
  0x26   :  { %1860 = vmatmul.mubr.msk.f32.gmra.mrb[4].mxu0 %vm66_vm0, %v44_v22  ;;  %2278 = vmatprep.subr.bf16.mxu1 %v2277_v28 }
  0x27   :  { %1862 = vmatprep.mubr.msk.f32.mxu0 %vm66_vm0, %v45_v24 }
  0x29   :  { %2280 = vmatpush3.bf16.msra.mxu1 %v2277_v28 }
  0x2a   :  { %1863 = vmatmul.mubr.msk.f32.gmra.mrb[6].mxu0 %vm66_vm0, %v46_v27  ;;  %2282 = vmatprep.subr.bf16.mxu1 %v2281_v33 }
  0x2b   :  { %1865 = vmatprep.mubr.msk.f32.mxu0 %vm66_vm0, %v47_v29 }
  0x2d   :  { %2284 = vmatpush3.bf16.msra.mxu1 %v2281_v33 }
  0x2e   :  { %1866 = vmatmul.mubr.msk.f32.gmra.mrb[8].mxu0 %vm66_vm0, %v48_v32  ;;  %2286 = vmatprep.subr.bf16.mxu1 %v2285_v38  ;;  %v1624_v32 = vld [vmem:[%s2940_s4] ss:$0 sm:$0xff]  ;;  %s1595_s4 = sshll.u32 %s2382_s3, 4  ;;  %s1596_s4 = int_to_ptr.vmem [resolvable:$true] %s1595_s4 }
  0x2f   :  { %1868 = vmatprep.mubr.msk.f32.mxu0 %vm66_vm0, %v49_v34  ;;  %s2353_s7 = scalar_lea.vmem %s1596_s4, 2048  ;;  %p2358_p9 = scmp.lt.s32.totalorder %s1596_s4, %s1596_s4 }
  0x30   :  { %p2354_p8 = scmp.ne.s32.totalorder %s1596_s4, %s2353_s7  ;;  %p2359_p10 = scmp.lt.s32.totalorder %s2353_s7, %s2353_s7 }
  0x31   :  { %2288 = vmatpush3.bf16.msra.mxu1 %v2285_v38 }
  0x32   :  { %1869 = vmatmul.mubr.msk.f32.gmra.mrb[10].mxu0 %vm66_vm0, %v50_v37  ;;  %2290 = vmatprep.subr.bf16.mxu1 %v2289_v45  ;;  %p2360_p11 = por %p2359_p10, %p2358_p9 }
  0x33   :  { %1871 = vmatprep.mubr.msk.f32.mxu0 %vm66_vm0, %v51_v39 }
  0x34   :  { %p2361_p12 = pnand %p2360_p11, %p2354_p8 }
  0x35   :  { %2292 = vmatpush3.bf16.msra.mxu1 %v2289_v45 }
  0x36   :  { %1872 = vmatmul.mubr.msk.f32.gmra.mrb[12].mxu0 %vm66_vm0, %v52_v40 }
  0x37   :  { %1874 = vmatprep.mubr.msk.f32.mxu0 %vm66_vm0, %v53_v41 }
  0x3a   :  { %1875 = vmatmul.mubr.msk.f32.gmra.mrb[14].mxu0 %vm66_vm0, %v54_v42 }
  0x3b   :  { %1949 = vmatprep.mubr.bf16.mxu0 %v2559_v31 }
  0xf1   :  { %v1855_v47 = vpop.f32.mrb[0].mxu0 }
  0xf2   :  { %v187_v48 = vadd.f32 %v1855_v47, %v1607_v46  ;;  %v181_v49 = vpop.f32.mrb[1].mxu0 }
  0xf3   :  { %v182_v50 = vadd.f32 %v1607_v46, %v181_v49 }
  0xf4   :  { %v261_v53 = vmax.f32 %v187_v48, 0.0 }
  0xf5   :  { %v1858_v51 = vpop.f32.mrb[2].mxu0  ;;  %v260_v52 = vmax.f32 %v182_v50, 0.0 }
  0xf6   :  { %v197_v54 = vadd.f32 %v1858_v51, %v1607_v46  ;;  %v191_v55 = vpop.f32.mrb[3].mxu0 }
  0xf7   :  { %v192_v56 = vadd.f32 %v1607_v46, %v191_v55  ;;  %1909 = vmatprep.mubr.f32.mxu1 %v260_v52 }
  0xf8   :  { %1910 = vmatmul.mubr.f32.vlgmr.msra.gmra.mrb[0].mxu1 %v261_v53  ;;  %v263_v59 = vmax.f32 %v197_v54, 0.0 }
  0xf9   :  { %v262_v57 = vmax.f32 %v192_v56, 0.0  ;;  %v1861_v58 = vpop.f32.mrb[4].mxu0 }
  0xfa   :  { %v207_v60 = vadd.f32 %v1861_v58, %v1607_v46  ;;  %v201_v61 = vpop.f32.mrb[5].mxu0 }
  0xfb   :  { %v202_v62 = vadd.f32 %v1607_v46, %v201_v61  ;;  %1912 = vmatprep.mubr.f32.mxu1 %v262_v57 }
  0xfc   :  { %1913 = vmatmul.mubr.f32.gmra.mrb[2].mxu1 %v263_v59  ;;  %v265_v1 = vmax.f32 %v207_v60, 0.0 }
  0xfd   :  { %v264_v63 = vmax.f32 %v202_v62, 0.0  ;;  %v1864_v0 = vpop.f32.mrb[6].mxu0 }
  0xfe   :  { %v217_v2 = vadd.f32 %v1864_v0, %v1607_v46  ;;  %v211_v3 = vpop.f32.mrb[7].mxu0 }
  0xff   :  { %v212_v4 = vadd.f32 %v1607_v46, %v211_v3  ;;  %1915 = vmatprep.mubr.f32.mxu1 %v264_v63 }
 0x100   :  { %1916 = vmatmul.mubr.f32.gmra.mrb[4].mxu1 %v265_v1  ;;  %v267_v7 = vmax.f32 %v217_v2, 0.0 }
 0x101   :  { %v266_v5 = vmax.f32 %v212_v4, 0.0  ;;  %v1867_v6 = vpop.f32.mrb[8].mxu0 }
 0x102   :  { %v227_v8 = vadd.f32 %v1867_v6, %v1607_v46  ;;  %v221_v9 = vpop.f32.mrb[9].mxu0 }
 0x103   :  { %v222_v10 = vadd.f32 %v1607_v46, %v221_v9  ;;  %1918 = vmatprep.mubr.f32.mxu1 %v266_v5  ;;  %v2614_v9 = vld [vmem:[#allocation2 + $0x8] sm:$0xff]  }
 0x104   :  { %1919 = vmatmul.mubr.f32.gmra.mrb[6].mxu1 %v267_v7  ;;  %v269_v13 = vmax.f32 %v227_v8, 0.0 }
 0x105   :  { %v268_v11 = vmax.f32 %v222_v10, 0.0  ;;  %v1870_v12 = vpop.f32.mrb[10].mxu0  ;;  %v2616_v10 = vld [vmem:[#allocation2 + $0x10] sm:$0xff]  }
 0x106   :  { %v237_v14 = vadd.f32 %v1870_v12, %v1607_v46  ;;  %v231_v15 = vpop.f32.mrb[11].mxu0  ;;  %v2622_v12 = vld [vmem:[#allocation2 + $0x20] sm:$0xff]  }
 0x107   :  { %v232_v16 = vadd.f32 %v1607_v46, %v231_v15  ;;  %1921 = vmatprep.mubr.f32.mxu1 %v268_v11  ;;  %v2620_v11 = vld [vmem:[#allocation2 + $0x18] sm:$0xff]  }
 0x108   :  { %1922 = vmatmul.mubr.f32.gmra.mrb[8].mxu1 %v269_v13  ;;  %v271_v19 = vmax.f32 %v237_v14, 0.0  ;;  %v2626_v13 = vld [vmem:[#allocation2 + $0x28] sm:$0xff]   ;;  %v2628_v14 = vld [vmem:[#allocation2 + $0x30] sm:$0xff]   ;;  %v2632_v15 = vld [vmem:[#allocation2 + $0x38] sm:$0xff]  }
 0x109   :  { %v270_v17 = vmax.f32 %v232_v16, 0.0  ;;  %v1873_v18 = vpop.f32.mrb[12].mxu0 }
 0x10a   :  { %v247_v20 = vadd.f32 %v1873_v18, %v1607_v46  ;;  %v241_v21 = vpop.f32.mrb[13].mxu0 }
 0x10b   :  { %v242_v22 = vadd.f32 %v1607_v46, %v241_v21  ;;  %1924 = vmatprep.mubr.f32.mxu1 %v270_v17 }
 0x10c   :  { %1925 = vmatmul.mubr.f32.gmra.mrb[10].mxu1 %v271_v19  ;;  %v273_v25 = vmax.f32 %v247_v20, 0.0 }
 0x10d   :  { %v272_v23 = vmax.f32 %v242_v22, 0.0  ;;  %v1876_v24 = vpop.f32.mrb[14].mxu0 }
 0x10e   :  { %v257_v26 = vadd.f32 %v1876_v24, %v1607_v46  ;;  %v251_v27 = vpop.f32.mrb[15].mxu0 }
 0x10f   :  { %v252_v28 = vadd.f32 %v1607_v46, %v251_v27  ;;  %1927 = vmatprep.mubr.f32.mxu1 %v272_v23 }
 0x110   :  { %1928 = vmatmul.mubr.f32.gmra.mrb[12].mxu1 %v273_v25  ;;  %v275_v30 = vmax.f32 %v257_v26, 0.0 }
 0x111   :  { %v274_v29 = vmax.f32 %v252_v28, 0.0 }
 0x113   :  { %1930 = vmatprep.mubr.f32.mxu1 %v274_v29 }
 0x114   :  { %1931 = vmatmul.mubr.f32.gmra.mrb[14].mxu1 %v275_v30 }
 0x115   :  { %1981 = vmatprep.mubr.bf16.mxu1 %v2559_v31 }
 0x1cb   :  { %v1911_v33 = vpop.f32.mrb[0].mxu1 }
 0x1cc   :  { %v2566_v34 = vadd.f32 %v1911_v33, %v1624_v32  ;;  %v365_v35 = vpop.f32.mrb[1].mxu1 }
 0x1cd   :  { %v2568_v36 = vadd.f32 %v1624_v32, %v365_v35 }
 0x1ce   :  { %v2643_v20 = vmul.f32 0.1, %v2566_v34 }
 0x1cf   :  { %v476_v37 = vpack.c.bf16 %v2566_v34, %v2568_v36  ;;  %v1914_v38 = vpop.f32.mrb[2].mxu1  ;;  %v2646_v21 = vmul.f32 0.1, %v2568_v36 }
 0x1d0   :  { %v2572_v39 = vadd.f32 %v1914_v38, %v1624_v32  ;;  %v375_v40 = vpop.f32.mrb[3].mxu1 }
 0x1d1   :  { %v2574_v41 = vadd.f32 %v1624_v32, %v375_v40  ;;  %1933 = vmatprep.subr.bf16.mxu0 %v476_v37 }
 0x1d2   :  { %1934 = vmatpush3.bf16.msra.mxu0 %v476_v37  ;;  %v2637_v17 = vmul.f32 0.1, %v2572_v39 }
 0x1d3   :  { %v477_v42 = vpack.c.bf16 %v2572_v39, %v2574_v41  ;;  %v1917_v43 = vpop.f32.mrb[4].mxu1  ;;  %v2640_v18 = vmul.f32 0.1, %v2574_v41 }
 0x1d4   :  { %v2578_v44 = vadd.f32 %v1917_v43, %v1624_v32  ;;  %v385_v45 = vpop.f32.mrb[5].mxu1 }
 0x1d5   :  { %v2580_v46 = vadd.f32 %v1624_v32, %v385_v45  ;;  %1935 = vmatprep.subr.bf16.mxu0 %v477_v42 }
 0x1d6   :  { %1936 = vmatpush3.bf16.msra.mxu0 %v477_v42  ;;  %v2659_v35 = vmul.f32 0.1, %v2578_v44 }
 0x1d7   :  { %v478_v47 = vpack.c.bf16 %v2578_v44, %v2580_v46  ;;  %v1920_v48 = vpop.f32.mrb[6].mxu1  ;;  %v2662_v36 = vmul.f32 0.1, %v2580_v46 }
 0x1d8   :  { %v2584_v49 = vadd.f32 %v1920_v48, %v1624_v32  ;;  %v395_v50 = vpop.f32.mrb[7].mxu1 }
 0x1d9   :  { %v2586_v51 = vadd.f32 %v1624_v32, %v395_v50  ;;  %1937 = vmatprep.subr.bf16.mxu0 %v478_v47 }
 0x1da   :  { %1938 = vmatpush3.bf16.msra.mxu0 %v478_v47 }
 0x1db   :  { %v479_v52 = vpack.c.bf16 %v2584_v49, %v2586_v51  ;;  %v1923_v53 = vpop.f32.mrb[8].mxu1  ;;  %v2656_v33 = vmul.f32 0.1, %v2586_v51 }
 0x1dc   :  { %v2590_v54 = vadd.f32 %v1923_v53, %v1624_v32  ;;  %v405_v55 = vpop.f32.mrb[9].mxu1 }
 0x1dd   :  { %v2592_v56 = vadd.f32 %v1624_v32, %v405_v55  ;;  %1939 = vmatprep.subr.bf16.mxu0 %v479_v52 }
 0x1de   :  { %1940 = vmatpush3.bf16.msra.mxu0 %v479_v52 }
 0x1df   :  { %v480_v57 = vpack.c.bf16 %v2590_v54, %v2592_v56  ;;  %v1926_v58 = vpop.f32.mrb[10].mxu1  ;;  %v2678_v50 = vmul.f32 0.1, %v2592_v56 }
 0x1e0   :  { %v2596_v59 = vadd.f32 %v1926_v58, %v1624_v32  ;;  %v415_v60 = vpop.f32.mrb[11].mxu1 }
 0x1e1   :  { %v2598_v61 = vadd.f32 %v1624_v32, %v415_v60  ;;  %1941 = vmatprep.subr.bf16.mxu0 %v480_v57 }
 0x1e2   :  { %1942 = vmatpush3.bf16.msra.mxu0 %v480_v57  ;;  %v2669_v44 = vmul.f32 0.1, %v2596_v59 }
 0x1e3   :  { %v481_v62 = vpack.c.bf16 %v2596_v59, %v2598_v61  ;;  %v1929_v63 = vpop.f32.mrb[12].mxu1  ;;  %v2672_v46 = vmul.f32 0.1, %v2598_v61 }
 0x1e4   :  { %v2602_v0 = vadd.f32 %v1929_v63, %v1624_v32  ;;  %v425_v1 = vpop.f32.mrb[13].mxu1 }
 0x1e5   :  { %v2604_v2 = vadd.f32 %v1624_v32, %v425_v1  ;;  %1943 = vmatprep.subr.bf16.mxu0 %v481_v62 }
 0x1e6   :  { %1944 = vmatpush3.bf16.msra.mxu0 %v481_v62  ;;  %v2691_v63 = vmul.f32 0.1, %v2602_v0 }
 0x1e7   :  { %v482_v3 = vpack.c.bf16 %v2602_v0, %v2604_v2  ;;  %v1932_v4 = vpop.f32.mrb[14].mxu1  ;;  %v2694_v1 = vmul.f32 0.1, %v2604_v2 }
 0x1e8   :  { %v2608_v5 = vadd.f32 %v1932_v4, %v1624_v32  ;;  %v435_v6 = vpop.f32.mrb[15].mxu1 }
 0x1e9   :  { %v2610_v7 = vadd.f32 %v1624_v32, %v435_v6  ;;  %1945 = vmatprep.subr.bf16.mxu0 %v482_v3  ;;  %v2653_v32 = vmul.f32 0.1, %v2584_v49  ;;  %v2675_v49 = vmul.f32 0.1, %v2590_v54 }
 0x1ea   :  { %1946 = vmatpush3.bf16.msra.mxu0 %v482_v3  ;;  %v2685_v54 = vmul.f32 0.1, %v2608_v5 }
 0x1eb   :  { %v483_v8 = vpack.c.bf16 %v2608_v5, %v2610_v7  ;;  %v2688_v56 = vmul.f32 0.1, %v2610_v7 }
 0x1ed   :  { %1947 = vmatprep.subr.bf16.mxu0 %v483_v8 }
 0x1ee   :  { %1948 = vmatpush3.bf16.msra.mxu0 %v483_v8 }
 0x1f1   :  { %1950 = vmatmul.mubr.bf16.vlgmr.msra.gmra.mrb[16].mxu0 %v2614_v9 }
 0x1f2   :  { %1953 = vmatprep.mubr.bf16.mxu0 %v2616_v10 }
 0x1f9   :  { %1954 = vmatmul.mubr.bf16.gmra.mrb[20].mxu0 %v2620_v11 }
 0x1fa   :  { %1957 = vmatprep.mubr.bf16.mxu0 %v2622_v12 }
 0x201   :  { %1958 = vmatmul.mubr.bf16.gmra.mrb[24].mxu0 %v2626_v13 }
 0x202   :  { %1961 = vmatprep.mubr.bf16.mxu0 %v2628_v14 }
 0x209   :  { %1962 = vmatmul.mubr.bf16.gmra.mrb[28].mxu0 %v2632_v15 }
 0x20a   :  { %2013 = vmatprep.mubr.bf16.mxu0 %v2559_v31 }
 0x2c4   :  { %v1951_v16 = vpop.f32.mrb[16].mxu0 }
 0x2c5   :  { %v566_v19 = vpop.f32.mrb[17].mxu0  ;;  %v575_v23 = vadd.f32 %v1951_v16, %v2640_v18 }
 0x2c6   :  { %v1952_v22 = vpop.f32.mrb[18].mxu0  ;;  %v567_v26 = vadd.f32 %v566_v19, %v2646_v21 }
 0x2c7   :  { %v578_v24 = vadd.f32 %v1952_v22, %v2637_v17  ;;  %v569_v25 = vpop.f32.mrb[19].mxu0 }
 0x2c8   :  { %v570_v27 = vadd.f32 %v569_v25, %v2643_v20 }
 0x2c9   :  { %v630_v28 = vpack.c.bf16 %v578_v24, %v575_v23 }
 0x2ca   :  { %v629_v29 = vpack.c.bf16 %v570_v27, %v567_v26 }
 0x2cc   :  { %v1955_v30 = vpop.f32.mrb[20].mxu0  ;;  %1965 = vmatprep.subr.bf16.mxu1 %v629_v29 }
 0x2cd   :  { %v582_v34 = vpop.f32.mrb[21].mxu0  ;;  %1966 = vmatpush3.bf16.msra.mxu1 %v629_v29  ;;  %v591_v38 = vadd.f32 %v1955_v30, %v2656_v33 }
 0x2ce   :  { %v1956_v37 = vpop.f32.mrb[22].mxu0  ;;  %1967 = vmatprep.subr.bf16.mxu1 %v630_v28  ;;  %v583_v41 = vadd.f32 %v582_v34, %v2662_v36 }
 0x2cf   :  { %v594_v39 = vadd.f32 %v1956_v37, %v2653_v32  ;;  %v585_v40 = vpop.f32.mrb[23].mxu0 }
 0x2d0   :  { %v586_v42 = vadd.f32 %v585_v40, %v2659_v35 }
 0x2d1   :  { %v632_v43 = vpack.c.bf16 %v594_v39, %v591_v38  ;;  %1968 = vmatpush3.bf16.msra.mxu1 %v630_v28 }
 0x2d2   :  { %v631_v45 = vpack.c.bf16 %v586_v42, %v583_v41 }
 0x2d4   :  { %v1959_v47 = vpop.f32.mrb[24].mxu0  ;;  %1969 = vmatprep.subr.bf16.mxu1 %v631_v45 }
 0x2d5   :  { %v598_v48 = vpop.f32.mrb[25].mxu0  ;;  %1970 = vmatpush3.bf16.msra.mxu1 %v631_v45  ;;  %v607_v52 = vadd.f32 %v1959_v47, %v2672_v46 }
 0x2d6   :  { %v1960_v51 = vpop.f32.mrb[26].mxu0  ;;  %1971 = vmatprep.subr.bf16.mxu1 %v632_v43  ;;  %v599_v57 = vadd.f32 %v598_v48, %v2678_v50 }
 0x2d7   :  { %v610_v53 = vadd.f32 %v1960_v51, %v2669_v44  ;;  %v601_v55 = vpop.f32.mrb[27].mxu0 }
 0x2d8   :  { %v602_v58 = vadd.f32 %v601_v55, %v2675_v49 }
 0x2d9   :  { %v634_v59 = vpack.c.bf16 %v610_v53, %v607_v52  ;;  %1972 = vmatpush3.bf16.msra.mxu1 %v632_v43 }
 0x2da   :  { %v633_v60 = vpack.c.bf16 %v602_v58, %v599_v57 }
 0x2dc   :  { %v1963_v61 = vpop.f32.mrb[28].mxu0  ;;  %1973 = vmatprep.subr.bf16.mxu1 %v633_v60 }
 0x2dd   :  { %v614_v62 = vpop.f32.mrb[29].mxu0  ;;  %1974 = vmatpush3.bf16.msra.mxu1 %v633_v60  ;;  %v623_v4 = vadd.f32 %v1963_v61, %v2688_v56 }
 0x2de   :  { %v1964_v3 = vpop.f32.mrb[30].mxu0  ;;  %1975 = vmatprep.subr.bf16.mxu1 %v634_v59  ;;  %v615_v5 = vadd.f32 %v614_v62, %v2694_v1 }
 0x2df   :  { %v626_v6 = vadd.f32 %v1964_v3, %v2685_v54  ;;  %v617_v8 = vpop.f32.mrb[31].mxu0 }
 0x2e0   :  { %v618_v7 = vadd.f32 %v617_v8, %v2691_v63 }
 0x2e1   :  { %v636_v16 = vpack.c.bf16 %v626_v6, %v623_v4  ;;  %1976 = vmatpush3.bf16.msra.mxu1 %v634_v59 }
 0x2e2   :  { %v635_v19 = vpack.c.bf16 %v618_v7, %v615_v5 }
 0x2e4   :  { %1977 = vmatprep.subr.bf16.mxu1 %v635_v19 }
 0x2e5   :  { %1978 = vmatpush3.bf16.msra.mxu1 %v635_v19 }
 0x2e6   :  { %1979 = vmatprep.subr.bf16.mxu1 %v636_v16 }
 0x2e9   :  { %1980 = vmatpush3.bf16.msra.mxu1 %v636_v16 }
 0x2ec   :  { %1982 = vmatmul.mubr.bf16.vlgmr.msra.gmra.mrb[16].mxu1 %v2614_v9 }
 0x2ed   :  { %1985 = vmatprep.mubr.bf16.mxu1 %v2616_v10 }
 0x2f4   :  { %1986 = vmatmul.mubr.bf16.gmra.mrb[20].mxu1 %v2620_v11 }
 0x2f5   :  { %1989 = vmatprep.mubr.bf16.mxu1 %v2622_v12 }
 0x2fc   :  { %1990 = vmatmul.mubr.bf16.gmra.mrb[24].mxu1 %v2626_v13 }
 0x2fd   :  { %1993 = vmatprep.mubr.bf16.mxu1 %v2628_v14 }
 0x304   :  { %1994 = vmatmul.mubr.bf16.gmra.mrb[28].mxu1 %v2632_v15 }
 0x305   :  { %2045 = vmatprep.mubr.bf16.mxu1 %v2559_v31 }
 0x3bf   :  { %v1983_v0 = vpop.f32.mrb[16].mxu1 }
 0x3c0   :  { %v671_v2 = vpop.f32.mrb[17].mxu1  ;;  %v680_v23 = vadd.f32 %v1983_v0, %v2640_v18 }
 0x3c1   :  { %v1984_v22 = vpop.f32.mrb[18].mxu1  ;;  %v672_v26 = vadd.f32 %v671_v2, %v2646_v21 }
 0x3c2   :  { %v683_v24 = vadd.f32 %v1984_v22, %v2637_v17  ;;  %v674_v25 = vpop.f32.mrb[19].mxu1 }
 0x3c3   :  { %v675_v27 = vadd.f32 %v674_v25, %v2643_v20 }
 0x3c4   :  { %v735_v28 = vpack.c.bf16 %v683_v24, %v680_v23 }
 0x3c5   :  { %v734_v29 = vpack.c.bf16 %v675_v27, %v672_v26 }
 0x3c7   :  { %v1987_v30 = vpop.f32.mrb[20].mxu1  ;;  %1997 = vmatprep.subr.bf16.mxu0 %v734_v29 }
 0x3c8   :  { %v687_v34 = vpop.f32.mrb[21].mxu1  ;;  %1998 = vmatpush3.bf16.msra.mxu0 %v734_v29  ;;  %v696_v38 = vadd.f32 %v1987_v30, %v2656_v33 }
 0x3c9   :  { %v1988_v37 = vpop.f32.mrb[22].mxu1  ;;  %1999 = vmatprep.subr.bf16.mxu0 %v735_v28  ;;  %v688_v41 = vadd.f32 %v687_v34, %v2662_v36 }
 0x3ca   :  { %v699_v39 = vadd.f32 %v1988_v37, %v2653_v32  ;;  %v690_v40 = vpop.f32.mrb[23].mxu1 }
 0x3cb   :  { %v691_v42 = vadd.f32 %v690_v40, %v2659_v35 }
 0x3cc   :  { %v737_v43 = vpack.c.bf16 %v699_v39, %v696_v38  ;;  %2000 = vmatpush3.bf16.msra.mxu0 %v735_v28 }
 0x3cd   :  { %v736_v45 = vpack.c.bf16 %v691_v42, %v688_v41 }
 0x3cf   :  { %v1991_v47 = vpop.f32.mrb[24].mxu1  ;;  %2001 = vmatprep.subr.bf16.mxu0 %v736_v45 }
 0x3d0   :  { %v703_v48 = vpop.f32.mrb[25].mxu1  ;;  %2002 = vmatpush3.bf16.msra.mxu0 %v736_v45  ;;  %v712_v52 = vadd.f32 %v1991_v47, %v2672_v46 }
 0x3d1   :  { %v1992_v51 = vpop.f32.mrb[26].mxu1  ;;  %2003 = vmatprep.subr.bf16.mxu0 %v737_v43  ;;  %v704_v57 = vadd.f32 %v703_v48, %v2678_v50 }
 0x3d2   :  { %v715_v53 = vadd.f32 %v1992_v51, %v2669_v44  ;;  %v706_v55 = vpop.f32.mrb[27].mxu1 }
 0x3d3   :  { %v707_v58 = vadd.f32 %v706_v55, %v2675_v49 }
 0x3d4   :  { %v739_v59 = vpack.c.bf16 %v715_v53, %v712_v52  ;;  %2004 = vmatpush3.bf16.msra.mxu0 %v737_v43 }
 0x3d5   :  { %v738_v60 = vpack.c.bf16 %v707_v58, %v704_v57 }
 0x3d7   :  { %v1995_v61 = vpop.f32.mrb[28].mxu1  ;;  %2005 = vmatprep.subr.bf16.mxu0 %v738_v60 }
 0x3d8   :  { %v719_v62 = vpop.f32.mrb[29].mxu1  ;;  %2006 = vmatpush3.bf16.msra.mxu0 %v738_v60  ;;  %v728_v4 = vadd.f32 %v1995_v61, %v2688_v56 }
 0x3d9   :  { %v1996_v3 = vpop.f32.mrb[30].mxu1  ;;  %2007 = vmatprep.subr.bf16.mxu0 %v739_v59  ;;  %v720_v5 = vadd.f32 %v719_v62, %v2694_v1 }
 0x3da   :  { %v731_v6 = vadd.f32 %v1996_v3, %v2685_v54  ;;  %v722_v8 = vpop.f32.mrb[31].mxu1 }
 0x3db   :  { %v723_v7 = vadd.f32 %v722_v8, %v2691_v63 }
 0x3dc   :  { %v741_v16 = vpack.c.bf16 %v731_v6, %v728_v4  ;;  %2008 = vmatpush3.bf16.msra.mxu0 %v739_v59 }
 0x3dd   :  { %v740_v19 = vpack.c.bf16 %v723_v7, %v720_v5 }
 0x3df   :  { %2009 = vmatprep.subr.bf16.mxu0 %v740_v19 }
 0x3e0   :  { %2010 = vmatpush3.bf16.msra.mxu0 %v740_v19 }
 0x3e1   :  { %2011 = vmatprep.subr.bf16.mxu0 %v741_v16 }
 0x3e4   :  { %2012 = vmatpush3.bf16.msra.mxu0 %v741_v16 }
 0x3e7   :  { %2014 = vmatmul.mubr.bf16.vlgmr.msra.gmra.mrb[32].mxu0 %v2614_v9 }
 0x3e8   :  { %2017 = vmatprep.mubr.bf16.mxu0 %v2616_v10 }
 0x3ef   :  { %2018 = vmatmul.mubr.bf16.gmra.mrb[36].mxu0 %v2620_v11 }
 0x3f0   :  { %2021 = vmatprep.mubr.bf16.mxu0 %v2622_v12 }
 0x3f7   :  { %2022 = vmatmul.mubr.bf16.gmra.mrb[40].mxu0 %v2626_v13 }
 0x3f8   :  { %2025 = vmatprep.mubr.bf16.mxu0 %v2628_v14 }
 0x3ff   :  { %2026 = vmatmul.mubr.bf16.gmra.mrb[44].mxu0 %v2632_v15 }
 0x400   :  { %2077 = vmatprep.mubr.bf16.mxu0 %v2559_v31 }
 0x4ba   :  { %v2015_v0 = vpop.f32.mrb[32].mxu0 }
 0x4bb   :  { %v776_v2 = vpop.f32.mrb[33].mxu0  ;;  %v785_v23 = vadd.f32 %v2015_v0, %v2640_v18 }
 0x4bc   :  { %v2016_v22 = vpop.f32.mrb[34].mxu0  ;;  %v777_v26 = vadd.f32 %v776_v2, %v2646_v21 }
 0x4bd   :  { %v788_v24 = vadd.f32 %v2016_v22, %v2637_v17  ;;  %v779_v25 = vpop.f32.mrb[35].mxu0 }
 0x4be   :  { %v780_v27 = vadd.f32 %v779_v25, %v2643_v20 }
 0x4bf   :  { %v840_v28 = vpack.c.bf16 %v788_v24, %v785_v23 }
 0x4c0   :  { %v839_v29 = vpack.c.bf16 %v780_v27, %v777_v26 }
 0x4c2   :  { %v2019_v30 = vpop.f32.mrb[36].mxu0  ;;  %2029 = vmatprep.subr.bf16.mxu1 %v839_v29 }
 0x4c3   :  { %v792_v34 = vpop.f32.mrb[37].mxu0  ;;  %2030 = vmatpush3.bf16.msra.mxu1 %v839_v29  ;;  %v801_v38 = vadd.f32 %v2019_v30, %v2656_v33 }
 0x4c4   :  { %v2020_v37 = vpop.f32.mrb[38].mxu0  ;;  %2031 = vmatprep.subr.bf16.mxu1 %v840_v28  ;;  %v793_v41 = vadd.f32 %v792_v34, %v2662_v36 }
 0x4c5   :  { %v804_v39 = vadd.f32 %v2020_v37, %v2653_v32  ;;  %v795_v40 = vpop.f32.mrb[39].mxu0 }
 0x4c6   :  { %v796_v42 = vadd.f32 %v795_v40, %v2659_v35 }
 0x4c7   :  { %v842_v43 = vpack.c.bf16 %v804_v39, %v801_v38  ;;  %2032 = vmatpush3.bf16.msra.mxu1 %v840_v28 }
 0x4c8   :  { %v841_v45 = vpack.c.bf16 %v796_v42, %v793_v41 }
 0x4ca   :  { %v2023_v47 = vpop.f32.mrb[40].mxu0  ;;  %2033 = vmatprep.subr.bf16.mxu1 %v841_v45 }
 0x4cb   :  { %v808_v48 = vpop.f32.mrb[41].mxu0  ;;  %2034 = vmatpush3.bf16.msra.mxu1 %v841_v45  ;;  %v817_v52 = vadd.f32 %v2023_v47, %v2672_v46 }
 0x4cc   :  { %v2024_v51 = vpop.f32.mrb[42].mxu0  ;;  %2035 = vmatprep.subr.bf16.mxu1 %v842_v43  ;;  %v809_v57 = vadd.f32 %v808_v48, %v2678_v50 }
 0x4cd   :  { %v820_v53 = vadd.f32 %v2024_v51, %v2669_v44  ;;  %v811_v55 = vpop.f32.mrb[43].mxu0 }
 0x4ce   :  { %v812_v58 = vadd.f32 %v811_v55, %v2675_v49 }
 0x4cf   :  { %v844_v59 = vpack.c.bf16 %v820_v53, %v817_v52  ;;  %2036 = vmatpush3.bf16.msra.mxu1 %v842_v43 }
 0x4d0   :  { %v843_v60 = vpack.c.bf16 %v812_v58, %v809_v57 }
 0x4d2   :  { %v2027_v61 = vpop.f32.mrb[44].mxu0  ;;  %2037 = vmatprep.subr.bf16.mxu1 %v843_v60 }
 0x4d3   :  { %v824_v62 = vpop.f32.mrb[45].mxu0  ;;  %2038 = vmatpush3.bf16.msra.mxu1 %v843_v60  ;;  %v833_v4 = vadd.f32 %v2027_v61, %v2688_v56 }
 0x4d4   :  { %v2028_v3 = vpop.f32.mrb[46].mxu0  ;;  %2039 = vmatprep.subr.bf16.mxu1 %v844_v59  ;;  %v825_v5 = vadd.f32 %v824_v62, %v2694_v1 }
 0x4d5   :  { %v836_v6 = vadd.f32 %v2028_v3, %v2685_v54  ;;  %v827_v8 = vpop.f32.mrb[47].mxu0 }
 0x4d6   :  { %v828_v7 = vadd.f32 %v827_v8, %v2691_v63 }
 0x4d7   :  { %v846_v16 = vpack.c.bf16 %v836_v6, %v833_v4  ;;  %2040 = vmatpush3.bf16.msra.mxu1 %v844_v59 }
 0x4d8   :  { %v845_v19 = vpack.c.bf16 %v828_v7, %v825_v5 }
 0x4da   :  { %2041 = vmatprep.subr.bf16.mxu1 %v845_v19 }
 0x4db   :  { %2042 = vmatpush3.bf16.msra.mxu1 %v845_v19 }
 0x4dc   :  { %2043 = vmatprep.subr.bf16.mxu1 %v846_v16 }
 0x4df   :  { %2044 = vmatpush3.bf16.msra.mxu1 %v846_v16 }
 0x4e2   :  { %2046 = vmatmul.mubr.bf16.vlgmr.msra.gmra.mrb[32].mxu1 %v2614_v9 }
 0x4e3   :  { %2049 = vmatprep.mubr.bf16.mxu1 %v2616_v10 }
 0x4ea   :  { %2050 = vmatmul.mubr.bf16.gmra.mrb[36].mxu1 %v2620_v11 }
 0x4eb   :  { %2053 = vmatprep.mubr.bf16.mxu1 %v2622_v12 }
 0x4f2   :  { %2054 = vmatmul.mubr.bf16.gmra.mrb[40].mxu1 %v2626_v13 }
 0x4f3   :  { %2057 = vmatprep.mubr.bf16.mxu1 %v2628_v14 }
 0x4fa   :  { %2058 = vmatmul.mubr.bf16.gmra.mrb[44].mxu1 %v2632_v15 }
 0x4fb   :  { %2109 = vmatprep.mubr.bf16.mxu1 %v2559_v31 }
 0x5b5   :  { %v2047_v0 = vpop.f32.mrb[32].mxu1 }
 0x5b6   :  { %v881_v2 = vpop.f32.mrb[33].mxu1  ;;  %v890_v23 = vadd.f32 %v2047_v0, %v2640_v18 }
 0x5b7   :  { %v2048_v22 = vpop.f32.mrb[34].mxu1  ;;  %v882_v26 = vadd.f32 %v881_v2, %v2646_v21 }
 0x5b8   :  { %v893_v24 = vadd.f32 %v2048_v22, %v2637_v17  ;;  %v884_v25 = vpop.f32.mrb[35].mxu1 }
 0x5b9   :  { %v885_v27 = vadd.f32 %v884_v25, %v2643_v20 }
 0x5ba   :  { %v945_v28 = vpack.c.bf16 %v893_v24, %v890_v23 }
 0x5bb   :  { %v944_v29 = vpack.c.bf16 %v885_v27, %v882_v26 }
 0x5bd   :  { %v2051_v30 = vpop.f32.mrb[36].mxu1  ;;  %2061 = vmatprep.subr.bf16.mxu0 %v944_v29 }
 0x5be   :  { %v897_v34 = vpop.f32.mrb[37].mxu1  ;;  %2062 = vmatpush3.bf16.msra.mxu0 %v944_v29  ;;  %v906_v38 = vadd.f32 %v2051_v30, %v2656_v33 }
 0x5bf   :  { %v2052_v37 = vpop.f32.mrb[38].mxu1  ;;  %2063 = vmatprep.subr.bf16.mxu0 %v945_v28  ;;  %v898_v41 = vadd.f32 %v897_v34, %v2662_v36 }
 0x5c0   :  { %v909_v39 = vadd.f32 %v2052_v37, %v2653_v32  ;;  %v900_v40 = vpop.f32.mrb[39].mxu1 }
 0x5c1   :  { %v901_v42 = vadd.f32 %v900_v40, %v2659_v35 }
 0x5c2   :  { %v947_v43 = vpack.c.bf16 %v909_v39, %v906_v38  ;;  %2064 = vmatpush3.bf16.msra.mxu0 %v945_v28 }
 0x5c3   :  { %v946_v45 = vpack.c.bf16 %v901_v42, %v898_v41 }
 0x5c5   :  { %v2055_v47 = vpop.f32.mrb[40].mxu1  ;;  %2065 = vmatprep.subr.bf16.mxu0 %v946_v45 }
 0x5c6   :  { %v913_v48 = vpop.f32.mrb[41].mxu1  ;;  %2066 = vmatpush3.bf16.msra.mxu0 %v946_v45  ;;  %v922_v52 = vadd.f32 %v2055_v47, %v2672_v46 }
 0x5c7   :  { %v2056_v51 = vpop.f32.mrb[42].mxu1  ;;  %2067 = vmatprep.subr.bf16.mxu0 %v947_v43  ;;  %v914_v57 = vadd.f32 %v913_v48, %v2678_v50 }
 0x5c8   :  { %v925_v53 = vadd.f32 %v2056_v51, %v2669_v44  ;;  %v916_v55 = vpop.f32.mrb[43].mxu1 }
 0x5c9   :  { %v917_v58 = vadd.f32 %v916_v55, %v2675_v49 }
 0x5ca   :  { %v949_v59 = vpack.c.bf16 %v925_v53, %v922_v52  ;;  %2068 = vmatpush3.bf16.msra.mxu0 %v947_v43 }
 0x5cb   :  { %v948_v60 = vpack.c.bf16 %v917_v58, %v914_v57 }
 0x5cd   :  { %v2059_v61 = vpop.f32.mrb[44].mxu1  ;;  %2069 = vmatprep.subr.bf16.mxu0 %v948_v60 }
 0x5ce   :  { %v929_v62 = vpop.f32.mrb[45].mxu1  ;;  %2070 = vmatpush3.bf16.msra.mxu0 %v948_v60  ;;  %v938_v4 = vadd.f32 %v2059_v61, %v2688_v56 }
 0x5cf   :  { %v2060_v3 = vpop.f32.mrb[46].mxu1  ;;  %2071 = vmatprep.subr.bf16.mxu0 %v949_v59  ;;  %v930_v5 = vadd.f32 %v929_v62, %v2694_v1 }
 0x5d0   :  { %v941_v6 = vadd.f32 %v2060_v3, %v2685_v54  ;;  %v932_v8 = vpop.f32.mrb[47].mxu1 }
 0x5d1   :  { %v933_v7 = vadd.f32 %v932_v8, %v2691_v63 }
 0x5d2   :  { %v951_v16 = vpack.c.bf16 %v941_v6, %v938_v4  ;;  %2072 = vmatpush3.bf16.msra.mxu0 %v949_v59 }
 0x5d3   :  { %v950_v19 = vpack.c.bf16 %v933_v7, %v930_v5 }
 0x5d5   :  { %2073 = vmatprep.subr.bf16.mxu0 %v950_v19 }
 0x5d6   :  { %2074 = vmatpush3.bf16.msra.mxu0 %v950_v19 }
 0x5d7   :  { %2075 = vmatprep.subr.bf16.mxu0 %v951_v16 }
 0x5da   :  { %2076 = vmatpush3.bf16.msra.mxu0 %v951_v16 }
 0x5dd   :  { %2078 = vmatmul.mubr.bf16.vlgmr.msra.gmra.mrb[48].mxu0 %v2614_v9 }
 0x5de   :  { %2081 = vmatprep.mubr.bf16.mxu0 %v2616_v10 }
 0x5e5   :  { %2082 = vmatmul.mubr.bf16.gmra.mrb[52].mxu0 %v2620_v11 }
 0x5e6   :  { %2085 = vmatprep.mubr.bf16.mxu0 %v2622_v12 }
 0x5ed   :  { %2086 = vmatmul.mubr.bf16.gmra.mrb[56].mxu0 %v2626_v13 }
 0x5ee   :  { %2089 = vmatprep.mubr.bf16.mxu0 %v2628_v14 }
 0x5f5   :  { %2090 = vmatmul.mubr.bf16.gmra.mrb[60].mxu0 %v2632_v15 }
 0x5f6   :  { %2141 = vmatprep.mubr.bf16.mxu0 %v2559_v31 }
 0x6b0   :  { %v2079_v0 = vpop.f32.mrb[48].mxu0 }
 0x6b1   :  { %v986_v2 = vpop.f32.mrb[49].mxu0  ;;  %v995_v23 = vadd.f32 %v2079_v0, %v2640_v18 }
 0x6b2   :  { %v2080_v22 = vpop.f32.mrb[50].mxu0  ;;  %v987_v26 = vadd.f32 %v986_v2, %v2646_v21 }
 0x6b3   :  { %v998_v24 = vadd.f32 %v2080_v22, %v2637_v17  ;;  %v989_v25 = vpop.f32.mrb[51].mxu0 }
 0x6b4   :  { %v990_v27 = vadd.f32 %v989_v25, %v2643_v20 }
 0x6b5   :  { %v1050_v28 = vpack.c.bf16 %v998_v24, %v995_v23 }
 0x6b6   :  { %v1049_v29 = vpack.c.bf16 %v990_v27, %v987_v26 }
 0x6b8   :  { %v2083_v30 = vpop.f32.mrb[52].mxu0  ;;  %2093 = vmatprep.subr.bf16.mxu1 %v1049_v29 }
 0x6b9   :  { %v1002_v34 = vpop.f32.mrb[53].mxu0  ;;  %2094 = vmatpush3.bf16.msra.mxu1 %v1049_v29  ;;  %v1011_v38 = vadd.f32 %v2083_v30, %v2656_v33 }
 0x6ba   :  { %v2084_v37 = vpop.f32.mrb[54].mxu0  ;;  %2095 = vmatprep.subr.bf16.mxu1 %v1050_v28  ;;  %v1003_v41 = vadd.f32 %v1002_v34, %v2662_v36 }
 0x6bb   :  { %v1014_v39 = vadd.f32 %v2084_v37, %v2653_v32  ;;  %v1005_v40 = vpop.f32.mrb[55].mxu0 }
 0x6bc   :  { %v1006_v42 = vadd.f32 %v1005_v40, %v2659_v35 }
 0x6bd   :  { %v1052_v43 = vpack.c.bf16 %v1014_v39, %v1011_v38  ;;  %2096 = vmatpush3.bf16.msra.mxu1 %v1050_v28 }
 0x6be   :  { %v1051_v45 = vpack.c.bf16 %v1006_v42, %v1003_v41 }
 0x6c0   :  { %v2087_v47 = vpop.f32.mrb[56].mxu0  ;;  %2097 = vmatprep.subr.bf16.mxu1 %v1051_v45 }
 0x6c1   :  { %v1018_v48 = vpop.f32.mrb[57].mxu0  ;;  %2098 = vmatpush3.bf16.msra.mxu1 %v1051_v45  ;;  %v1027_v52 = vadd.f32 %v2087_v47, %v2672_v46 }
 0x6c2   :  { %v2088_v51 = vpop.f32.mrb[58].mxu0  ;;  %2099 = vmatprep.subr.bf16.mxu1 %v1052_v43  ;;  %v1019_v57 = vadd.f32 %v1018_v48, %v2678_v50 }
 0x6c3   :  { %v1030_v53 = vadd.f32 %v2088_v51, %v2669_v44  ;;  %v1021_v55 = vpop.f32.mrb[59].mxu0 }
 0x6c4   :  { %v1022_v58 = vadd.f32 %v1021_v55, %v2675_v49 }
 0x6c5   :  { %v1054_v59 = vpack.c.bf16 %v1030_v53, %v1027_v52  ;;  %2100 = vmatpush3.bf16.msra.mxu1 %v1052_v43 }
 0x6c6   :  { %v1053_v60 = vpack.c.bf16 %v1022_v58, %v1019_v57 }
 0x6c8   :  { %v2091_v61 = vpop.f32.mrb[60].mxu0  ;;  %2101 = vmatprep.subr.bf16.mxu1 %v1053_v60 }
 0x6c9   :  { %v1034_v62 = vpop.f32.mrb[61].mxu0  ;;  %2102 = vmatpush3.bf16.msra.mxu1 %v1053_v60  ;;  %v1043_v4 = vadd.f32 %v2091_v61, %v2688_v56 }
 0x6ca   :  { %v2092_v3 = vpop.f32.mrb[62].mxu0  ;;  %2103 = vmatprep.subr.bf16.mxu1 %v1054_v59  ;;  %v1035_v5 = vadd.f32 %v1034_v62, %v2694_v1 }
 0x6cb   :  { %v1046_v6 = vadd.f32 %v2092_v3, %v2685_v54  ;;  %v1037_v8 = vpop.f32.mrb[63].mxu0 }
 0x6cc   :  { %v1038_v7 = vadd.f32 %v1037_v8, %v2691_v63 }
 0x6cd   :  { %v1056_v16 = vpack.c.bf16 %v1046_v6, %v1043_v4  ;;  %2104 = vmatpush3.bf16.msra.mxu1 %v1054_v59 }
 0x6ce   :  { %v1055_v19 = vpack.c.bf16 %v1038_v7, %v1035_v5 }
 0x6d0   :  { %2105 = vmatprep.subr.bf16.mxu1 %v1055_v19 }
 0x6d1   :  { %2106 = vmatpush3.bf16.msra.mxu1 %v1055_v19 }
 0x6d2   :  { %2107 = vmatprep.subr.bf16.mxu1 %v1056_v16 }
 0x6d5   :  { %2108 = vmatpush3.bf16.msra.mxu1 %v1056_v16 }
 0x6d8   :  { %2110 = vmatmul.mubr.bf16.vlgmr.msra.gmra.mrb[48].mxu1 %v2614_v9 }
 0x6d9   :  { %2113 = vmatprep.mubr.bf16.mxu1 %v2616_v10 }
 0x6e0   :  { %2114 = vmatmul.mubr.bf16.gmra.mrb[52].mxu1 %v2620_v11 }
 0x6e1   :  { %2117 = vmatprep.mubr.bf16.mxu1 %v2622_v12 }
 0x6e8   :  { %2118 = vmatmul.mubr.bf16.gmra.mrb[56].mxu1 %v2626_v13 }
 0x6e9   :  { %2121 = vmatprep.mubr.bf16.mxu1 %v2628_v14 }
 0x6f0   :  { %2122 = vmatmul.mubr.bf16.gmra.mrb[60].mxu1 %v2632_v15 }
 0x6f1   :  { %2173 = vmatprep.mubr.bf16.mxu1 %v2559_v31 }
 0x7ab   :  { %v2111_v0 = vpop.f32.mrb[48].mxu1 }
 0x7ac   :  { %v1091_v2 = vpop.f32.mrb[49].mxu1  ;;  %v1100_v23 = vadd.f32 %v2111_v0, %v2640_v18 }
 0x7ad   :  { %v2112_v22 = vpop.f32.mrb[50].mxu1  ;;  %v1092_v26 = vadd.f32 %v1091_v2, %v2646_v21 }
 0x7ae   :  { %v1103_v24 = vadd.f32 %v2112_v22, %v2637_v17  ;;  %v1094_v25 = vpop.f32.mrb[51].mxu1 }
 0x7af   :  { %v1095_v27 = vadd.f32 %v1094_v25, %v2643_v20 }
 0x7b0   :  { %v1155_v28 = vpack.c.bf16 %v1103_v24, %v1100_v23 }
 0x7b1   :  { %v1154_v29 = vpack.c.bf16 %v1095_v27, %v1092_v26 }
 0x7b3   :  { %v2115_v30 = vpop.f32.mrb[52].mxu1  ;;  %2125 = vmatprep.subr.bf16.mxu0 %v1154_v29 }
 0x7b4   :  { %v1107_v34 = vpop.f32.mrb[53].mxu1  ;;  %2126 = vmatpush3.bf16.msra.mxu0 %v1154_v29  ;;  %v1116_v38 = vadd.f32 %v2115_v30, %v2656_v33 }
 0x7b5   :  { %v2116_v37 = vpop.f32.mrb[54].mxu1  ;;  %2127 = vmatprep.subr.bf16.mxu0 %v1155_v28  ;;  %v1108_v41 = vadd.f32 %v1107_v34, %v2662_v36 }
 0x7b6   :  { %v1119_v39 = vadd.f32 %v2116_v37, %v2653_v32  ;;  %v1110_v40 = vpop.f32.mrb[55].mxu1 }
 0x7b7   :  { %v1111_v42 = vadd.f32 %v1110_v40, %v2659_v35 }
 0x7b8   :  { %v1157_v43 = vpack.c.bf16 %v1119_v39, %v1116_v38  ;;  %2128 = vmatpush3.bf16.msra.mxu0 %v1155_v28 }
 0x7b9   :  { %v1156_v45 = vpack.c.bf16 %v1111_v42, %v1108_v41 }
 0x7bb   :  { %v2119_v47 = vpop.f32.mrb[56].mxu1  ;;  %2129 = vmatprep.subr.bf16.mxu0 %v1156_v45 }
 0x7bc   :  { %v1123_v48 = vpop.f32.mrb[57].mxu1  ;;  %2130 = vmatpush3.bf16.msra.mxu0 %v1156_v45  ;;  %v1132_v52 = vadd.f32 %v2119_v47, %v2672_v46 }
 0x7bd   :  { %v2120_v51 = vpop.f32.mrb[58].mxu1  ;;  %2131 = vmatprep.subr.bf16.mxu0 %v1157_v43  ;;  %v1124_v57 = vadd.f32 %v1123_v48, %v2678_v50 }
 0x7be   :  { %v1135_v53 = vadd.f32 %v2120_v51, %v2669_v44  ;;  %v1126_v55 = vpop.f32.mrb[59].mxu1 }
 0x7bf   :  { %v1127_v58 = vadd.f32 %v1126_v55, %v2675_v49 }
 0x7c0   :  { %v1159_v59 = vpack.c.bf16 %v1135_v53, %v1132_v52  ;;  %2132 = vmatpush3.bf16.msra.mxu0 %v1157_v43 }
 0x7c1   :  { %v1158_v60 = vpack.c.bf16 %v1127_v58, %v1124_v57 }
 0x7c3   :  { %v2123_v61 = vpop.f32.mrb[60].mxu1  ;;  %2133 = vmatprep.subr.bf16.mxu0 %v1158_v60 }
 0x7c4   :  { %v1139_v62 = vpop.f32.mrb[61].mxu1  ;;  %2134 = vmatpush3.bf16.msra.mxu0 %v1158_v60  ;;  %v1148_v4 = vadd.f32 %v2123_v61, %v2688_v56 }
 0x7c5   :  { %v2124_v3 = vpop.f32.mrb[62].mxu1  ;;  %2135 = vmatprep.subr.bf16.mxu0 %v1159_v59  ;;  %v1140_v5 = vadd.f32 %v1139_v62, %v2694_v1 }
 0x7c6   :  { %v1151_v6 = vadd.f32 %v2124_v3, %v2685_v54  ;;  %v1142_v8 = vpop.f32.mrb[63].mxu1 }
 0x7c7   :  { %v1143_v7 = vadd.f32 %v1142_v8, %v2691_v63 }
 0x7c8   :  { %v1161_v16 = vpack.c.bf16 %v1151_v6, %v1148_v4  ;;  %2136 = vmatpush3.bf16.msra.mxu0 %v1159_v59 }
 0x7c9   :  { %v1160_v19 = vpack.c.bf16 %v1143_v7, %v1140_v5 }
 0x7cb   :  { %2137 = vmatprep.subr.bf16.mxu0 %v1160_v19 }
 0x7cc   :  { %2138 = vmatpush3.bf16.msra.mxu0 %v1160_v19 }
 0x7cd   :  { %2139 = vmatprep.subr.bf16.mxu0 %v1161_v16 }
 0x7d0   :  { %2140 = vmatpush3.bf16.msra.mxu0 %v1161_v16 }
 0x7d3   :  { %2142 = vmatmul.mubr.bf16.vlgmr.msra.gmra.mrb[64].mxu0 %v2614_v9 }
 0x7d4   :  { %2145 = vmatprep.mubr.bf16.mxu0 %v2616_v10 }
 0x7db   :  { %2146 = vmatmul.mubr.bf16.gmra.mrb[68].mxu0 %v2620_v11 }
 0x7dc   :  { %2149 = vmatprep.mubr.bf16.mxu0 %v2622_v12 }
 0x7e3   :  { %2150 = vmatmul.mubr.bf16.gmra.mrb[72].mxu0 %v2626_v13 }
 0x7e4   :  { %2153 = vmatprep.mubr.bf16.mxu0 %v2628_v14 }
 0x7eb   :  { %2154 = vmatmul.mubr.bf16.gmra.mrb[76].mxu0 %v2632_v15 }
 0x7ec   :  { %2205 = vmatprep.mubr.bf16.mxu0 %v2559_v31 }
 0x8a6   :  { %v2143_v0 = vpop.f32.mrb[64].mxu0 }
 0x8a7   :  { %v1196_v2 = vpop.f32.mrb[65].mxu0  ;;  %v1205_v23 = vadd.f32 %v2143_v0, %v2640_v18 }
 0x8a8   :  { %v2144_v22 = vpop.f32.mrb[66].mxu0  ;;  %v1197_v26 = vadd.f32 %v1196_v2, %v2646_v21 }
 0x8a9   :  { %v1208_v24 = vadd.f32 %v2144_v22, %v2637_v17  ;;  %v1199_v25 = vpop.f32.mrb[67].mxu0 }
 0x8aa   :  { %v1200_v27 = vadd.f32 %v1199_v25, %v2643_v20 }
 0x8ab   :  { %v1260_v28 = vpack.c.bf16 %v1208_v24, %v1205_v23 }
 0x8ac   :  { %v1259_v29 = vpack.c.bf16 %v1200_v27, %v1197_v26 }
 0x8ae   :  { %v2147_v30 = vpop.f32.mrb[68].mxu0  ;;  %2157 = vmatprep.subr.bf16.mxu1 %v1259_v29 }
 0x8af   :  { %v1212_v34 = vpop.f32.mrb[69].mxu0  ;;  %2158 = vmatpush3.bf16.msra.mxu1 %v1259_v29  ;;  %v1221_v31 = vadd.f32 %v2147_v30, %v2656_v33 }
 0x8b0   :  { %v2148_v37 = vpop.f32.mrb[70].mxu0  ;;  %2159 = vmatprep.subr.bf16.mxu1 %v1260_v28  ;;  %v1213_v40 = vadd.f32 %v1212_v34, %v2662_v36 }
 0x8b1   :  { %v1224_v38 = vadd.f32 %v2148_v37, %v2653_v32  ;;  %v1215_v39 = vpop.f32.mrb[71].mxu0 }
 0x8b2   :  { %v1216_v41 = vadd.f32 %v1215_v39, %v2659_v35 }
 0x8b3   :  { %v1262_v42 = vpack.c.bf16 %v1224_v38, %v1221_v31  ;;  %2160 = vmatpush3.bf16.msra.mxu1 %v1260_v28 }
 0x8b4   :  { %v1261_v43 = vpack.c.bf16 %v1216_v41, %v1213_v40 }
 0x8b6   :  { %v2151_v45 = vpop.f32.mrb[72].mxu0  ;;  %2161 = vmatprep.subr.bf16.mxu1 %v1261_v43 }
 0x8b7   :  { %v1228_v47 = vpop.f32.mrb[73].mxu0  ;;  %2162 = vmatpush3.bf16.msra.mxu1 %v1261_v43  ;;  %v1237_v51 = vadd.f32 %v2151_v45, %v2672_v46 }
 0x8b8   :  { %v2152_v48 = vpop.f32.mrb[74].mxu0  ;;  %2163 = vmatprep.subr.bf16.mxu1 %v1262_v42  ;;  %v1229_v55 = vadd.f32 %v1228_v47, %v2678_v50 }
 0x8b9   :  { %v1240_v52 = vadd.f32 %v2152_v48, %v2669_v44  ;;  %v1231_v53 = vpop.f32.mrb[75].mxu0 }
 0x8ba   :  { %v1232_v57 = vadd.f32 %v1231_v53, %v2675_v49 }
 0x8bb   :  { %v1264_v58 = vpack.c.bf16 %v1240_v52, %v1237_v51  ;;  %2164 = vmatpush3.bf16.msra.mxu1 %v1262_v42 }
 0x8bc   :  { %v1263_v59 = vpack.c.bf16 %v1232_v57, %v1229_v55 }
 0x8be   :  { %v2155_v60 = vpop.f32.mrb[76].mxu0  ;;  %2165 = vmatprep.subr.bf16.mxu1 %v1263_v59 }
 0x8bf   :  { %v1244_v61 = vpop.f32.mrb[77].mxu0  ;;  %2166 = vmatpush3.bf16.msra.mxu1 %v1263_v59  ;;  %v1253_v3 = vadd.f32 %v2155_v60, %v2688_v56 }
 0x8c0   :  { %v2156_v62 = vpop.f32.mrb[78].mxu0  ;;  %2167 = vmatprep.subr.bf16.mxu1 %v1264_v58  ;;  %v1245_v8 = vadd.f32 %v1244_v61, %v2694_v1 }
 0x8c1   :  { %v1256_v4 = vadd.f32 %v2156_v62, %v2685_v54  ;;  %v1247_v6 = vpop.f32.mrb[79].mxu0  ;;  %v2868_v62 = vld [vmem:[#allocation2 + $0x8] sm:$0xff]  }
 0x8c2   :  { %v1248_v5 = vadd.f32 %v1247_v6, %v2691_v63  ;;  %v2874_v6 = vld [vmem:[#allocation2 + $0x20] sm:$0xff]  }
 0x8c3   :  { %v1266_v7 = vpack.c.bf16 %v1256_v4, %v1253_v3  ;;  %2168 = vmatpush3.bf16.msra.mxu1 %v1264_v58  ;;  %v2324_v3 = vld [vmem:[#allocation2 + $0x10] sm:$0xff]   ;;  %v2871_v4 = vld [vmem:[#allocation2 + $0x18] sm:$0xff]  }
 0x8c4   :  { %v1265_v16 = vpack.c.bf16 %v1248_v5, %v1245_v8  ;;  %v2877_v8 = vld [vmem:[#allocation2 + $0x28] sm:$0xff]   ;;  %v2880_v5 = vld [vmem:[#allocation2 + $0x30] sm:$0xff]  }
 0x8c6   :  { %2169 = vmatprep.subr.bf16.mxu1 %v1265_v16 }
 0x8c7   :  { %2170 = vmatpush3.bf16.msra.mxu1 %v1265_v16  ;;  %v2330_v16 = vld [vmem:[#allocation2] sm:$0xff]  }
 0x8c8   :  { %2171 = vmatprep.subr.bf16.mxu1 %v1266_v7 }
 0x8cb   :  { %2172 = vmatpush3.bf16.msra.mxu1 %v1266_v7  ;;  %v2883_v7 = vld [vmem:[#allocation2 + $0x38] sm:$0xff]  }
 0x8ce   :  { %2174 = vmatmul.mubr.bf16.vlgmr.msra.gmra.mrb[64].mxu1 %v2614_v9 }
 0x8cf   :  { %2177 = vmatprep.mubr.bf16.mxu1 %v2616_v10 }
 0x8d6   :  { %2178 = vmatmul.mubr.bf16.gmra.mrb[68].mxu1 %v2620_v11 }
 0x8d7   :  { %2181 = vmatprep.mubr.bf16.mxu1 %v2622_v12 }
 0x8de   :  { %2182 = vmatmul.mubr.bf16.gmra.mrb[72].mxu1 %v2626_v13 }
 0x8df   :  { %2185 = vmatprep.mubr.bf16.mxu1 %v2628_v14 }
 0x8e6   :  { %2186 = vmatmul.mubr.bf16.gmra.mrb[76].mxu1 %v2632_v15 }
 0x8e7   :  { %2241 = vmatprep.mubr.bf16.mxu1 %v2616_v10 }
 0x9a1   :  { %v2175_v19 = vpop.f32.mrb[64].mxu1 }
 0x9a2   :  { %v1301_v0 = vpop.f32.mrb[65].mxu1  ;;  %v1310_v22 = vadd.f32 %v2175_v19, %v2640_v18 }
 0x9a3   :  { %v2176_v2 = vpop.f32.mrb[66].mxu1  ;;  %v1302_v11 = vadd.f32 %v1301_v0, %v2646_v21 }
 0x9a4   :  { %v1313_v9 = vadd.f32 %v2176_v2, %v2637_v17  ;;  %v1304_v23 = vpop.f32.mrb[67].mxu1 }
 0x9a5   :  { %v1305_v12 = vadd.f32 %v1304_v23, %v2643_v20 }
 0x9a6   :  { %v1365_v24 = vpack.c.bf16 %v1313_v9, %v1310_v22 }
 0x9a7   :  { %v1364_v13 = vpack.c.bf16 %v1305_v12, %v1302_v11 }
 0x9a9   :  { %v2179_v25 = vpop.f32.mrb[68].mxu1  ;;  %2189 = vmatprep.subr.bf16.mxu0 %v1364_v13 }
 0x9aa   :  { %v1317_v14 = vpop.f32.mrb[69].mxu1  ;;  %2190 = vmatpush3.bf16.msra.mxu0 %v1364_v13  ;;  %v1326_v10 = vadd.f32 %v2179_v25, %v2656_v33 }
 0x9ab   :  { %v2180_v15 = vpop.f32.mrb[70].mxu1  ;;  %2191 = vmatprep.subr.bf16.mxu0 %v1365_v24  ;;  %v1318_v28 = vadd.f32 %v1317_v14, %v2662_v36 }
 0x9ac   :  { %v1329_v26 = vadd.f32 %v2180_v15, %v2653_v32  ;;  %v1320_v27 = vpop.f32.mrb[71].mxu1 }
 0x9ad   :  { %v1321_v29 = vadd.f32 %v1320_v27, %v2659_v35 }
 0x9ae   :  { %v1367_v30 = vpack.c.bf16 %v1329_v26, %v1326_v10  ;;  %2192 = vmatpush3.bf16.msra.mxu0 %v1365_v24 }
 0x9af   :  { %v1366_v34 = vpack.c.bf16 %v1321_v29, %v1318_v28 }
 0x9b1   :  { %v2183_v37 = vpop.f32.mrb[72].mxu1  ;;  %2193 = vmatprep.subr.bf16.mxu0 %v1366_v34 }
 0x9b2   :  { %v1333_v31 = vpop.f32.mrb[73].mxu1  ;;  %2194 = vmatpush3.bf16.msra.mxu0 %v1366_v34  ;;  %v1342_v39 = vadd.f32 %v2183_v37, %v2672_v46 }
 0x9b3   :  { %v2184_v38 = vpop.f32.mrb[74].mxu1  ;;  %2195 = vmatprep.subr.bf16.mxu0 %v1367_v30  ;;  %v1334_v42 = vadd.f32 %v1333_v31, %v2678_v50 }
 0x9b4   :  { %v1345_v40 = vadd.f32 %v2184_v38, %v2669_v44  ;;  %v1336_v41 = vpop.f32.mrb[75].mxu1 }
 0x9b5   :  { %v1337_v43 = vadd.f32 %v1336_v41, %v2675_v49 }
 0x9b6   :  { %v1369_v45 = vpack.c.bf16 %v1345_v40, %v1342_v39  ;;  %2196 = vmatpush3.bf16.msra.mxu0 %v1367_v30 }
 0x9b7   :  { %v1368_v47 = vpack.c.bf16 %v1337_v43, %v1334_v42 }
 0x9b9   :  { %v2187_v48 = vpop.f32.mrb[76].mxu1  ;;  %2197 = vmatprep.subr.bf16.mxu0 %v1368_v47 }
 0x9ba   :  { %v1349_v51 = vpop.f32.mrb[77].mxu1  ;;  %2198 = vmatpush3.bf16.msra.mxu0 %v1368_v47  ;;  %v1358_v53 = vadd.f32 %v2187_v48, %v2688_v56 }
 0x9bb   :  { %v2188_v52 = vpop.f32.mrb[78].mxu1  ;;  %2199 = vmatprep.subr.bf16.mxu0 %v1369_v45  ;;  %v1350_v58 = vadd.f32 %v1349_v51, %v2694_v1 }
 0x9bc   :  { %v1361_v55 = vadd.f32 %v2188_v52, %v2685_v54  ;;  %v1352_v57 = vpop.f32.mrb[79].mxu1 }
 0x9bd   :  { %v1353_v59 = vadd.f32 %v1352_v57, %v2691_v63 }
 0x9be   :  { %v1371_v60 = vpack.c.bf16 %v1361_v55, %v1358_v53  ;;  %2200 = vmatpush3.bf16.msra.mxu0 %v1369_v45 }
 0x9bf   :  { %v1370_v61 = vpack.c.bf16 %v1353_v59, %v1350_v58 }
 0x9c1   :  { %2201 = vmatprep.subr.bf16.mxu0 %v1370_v61 }
 0x9c2   :  { %2202 = vmatpush3.bf16.msra.mxu0 %v1370_v61 }
 0x9c3   :  { %2203 = vmatprep.subr.bf16.mxu0 %v1371_v60 }
 0x9c6   :  { %2204 = vmatpush3.bf16.msra.mxu0 %v1371_v60 }
 0x9c9   :  { %2206 = vmatmul.mubr.bf16.vlgmr.msra.gmra.mrb[80].mxu0 %v2868_v62 }
 0x9ca   :  { %2209 = vmatprep.mubr.bf16.mxu0 %v2324_v3 }
 0x9d1   :  { %2210 = vmatmul.mubr.bf16.gmra.mrb[84].mxu0 %v2871_v4 }
 0x9d2   :  { %2213 = vmatprep.mubr.bf16.mxu0 %v2874_v6 }
 0x9d9   :  { %2214 = vmatmul.mubr.bf16.gmra.mrb[88].mxu0 %v2877_v8 }
 0x9da   :  { %2217 = vmatprep.mubr.bf16.mxu0 %v2880_v5 }
 0x9e1   :  { %2218 = vmatmul.mubr.bf16.gmra.mrb[92].mxu0 %v2883_v7 }
 0x9e2   :  { %2237 = vmatprep.mubr.bf16.mxu0 %v2330_v16 }
 0xa9c   :  { %v2207_v19 = vpop.f32.mrb[80].mxu0 }
 0xa9d   :  { %v1406_v0 = vpop.f32.mrb[81].mxu0  ;;  %v1415_v22 = vadd.f32 %v2207_v19, %v2640_v18 }
 0xa9e   :  { %v2208_v2 = vpop.f32.mrb[82].mxu0  ;;  %v1407_v11 = vadd.f32 %v1406_v0, %v2646_v21 }
 0xa9f   :  { %v1418_v9 = vadd.f32 %v2208_v2, %v2637_v17  ;;  %v1409_v23 = vpop.f32.mrb[83].mxu0 }
 0xaa0   :  { %v1410_v12 = vadd.f32 %v1409_v23, %v2643_v20 }
 0xaa1   :  { %v1470_v24 = vpack.c.bf16 %v1418_v9, %v1415_v22 }
 0xaa2   :  { %v1469_v13 = vpack.c.bf16 %v1410_v12, %v1407_v11 }
 0xaa4   :  { %v2211_v25 = vpop.f32.mrb[84].mxu0  ;;  %2221 = vmatprep.subr.bf16.mxu0 %v1469_v13  ;;  %2293 = vmatprep.subr.bf16.mxu1 %v1469_v13 }
 0xaa5   :  { %v1422_v14 = vpop.f32.mrb[85].mxu0  ;;  %2222 = vmatpush3.bf16.msra.mxu0 %v1469_v13  ;;  %2301 = vmatpush3.bf16.msra.mxu1 %v1469_v13  ;;  %v1431_v10 = vadd.f32 %v2211_v25, %v2656_v33 }
 0xaa6   :  { %v2212_v15 = vpop.f32.mrb[86].mxu0  ;;  %2223 = vmatprep.subr.bf16.mxu0 %v1470_v24  ;;  %2294 = vmatprep.subr.bf16.mxu1 %v1470_v24  ;;  %v1423_v28 = vadd.f32 %v1422_v14, %v2662_v36 }
 0xaa7   :  { %v1434_v26 = vadd.f32 %v2212_v15, %v2653_v32  ;;  %v1425_v27 = vpop.f32.mrb[87].mxu0 }
 0xaa8   :  { %v1426_v29 = vadd.f32 %v1425_v27, %v2659_v35 }
 0xaa9   :  { %v1472_v30 = vpack.c.bf16 %v1434_v26, %v1431_v10  ;;  %2224 = vmatpush3.bf16.msra.mxu0 %v1470_v24  ;;  %2302 = vmatpush3.bf16.msra.mxu1 %v1470_v24 }
 0xaaa   :  { %v1471_v34 = vpack.c.bf16 %v1426_v29, %v1423_v28 }
 0xaac   :  { %v2215_v37 = vpop.f32.mrb[88].mxu0  ;;  %2225 = vmatprep.subr.bf16.mxu0 %v1471_v34  ;;  %2295 = vmatprep.subr.bf16.mxu1 %v1471_v34 }
 0xaad   :  { %v1438_v31 = vpop.f32.mrb[89].mxu0  ;;  %2226 = vmatpush3.bf16.msra.mxu0 %v1471_v34  ;;  %2303 = vmatpush3.bf16.msra.mxu1 %v1471_v34  ;;  %v1447_v39 = vadd.f32 %v2215_v37, %v2672_v46 }
 0xaae   :  { %v2216_v38 = vpop.f32.mrb[90].mxu0  ;;  %2227 = vmatprep.subr.bf16.mxu0 %v1472_v30  ;;  %2296 = vmatprep.subr.bf16.mxu1 %v1472_v30  ;;  %v1439_v42 = vadd.f32 %v1438_v31, %v2678_v50 }
 0xaaf   :  { %v1450_v40 = vadd.f32 %v2216_v38, %v2669_v44  ;;  %v1441_v41 = vpop.f32.mrb[91].mxu0 }
 0xab0   :  { %v1442_v43 = vadd.f32 %v1441_v41, %v2675_v49 }
 0xab1   :  { %v1474_v45 = vpack.c.bf16 %v1450_v40, %v1447_v39  ;;  %2228 = vmatpush3.bf16.msra.mxu0 %v1472_v30  ;;  %2304 = vmatpush3.bf16.msra.mxu1 %v1472_v30 }
 0xab2   :  { %v1473_v47 = vpack.c.bf16 %v1442_v43, %v1439_v42 }
 0xab4   :  { %v2219_v48 = vpop.f32.mrb[92].mxu0  ;;  %2229 = vmatprep.subr.bf16.mxu0 %v1473_v47  ;;  %2297 = vmatprep.subr.bf16.mxu1 %v1473_v47 }
 0xab5   :  { %v1454_v51 = vpop.f32.mrb[93].mxu0  ;;  %2230 = vmatpush3.bf16.msra.mxu0 %v1473_v47  ;;  %2305 = vmatpush3.bf16.msra.mxu1 %v1473_v47  ;;  %v1463_v53 = vadd.f32 %v2219_v48, %v2688_v56 }
 0xab6   :  { %v2220_v52 = vpop.f32.mrb[94].mxu0  ;;  %2231 = vmatprep.subr.bf16.mxu0 %v1474_v45  ;;  %2298 = vmatprep.subr.bf16.mxu1 %v1474_v45  ;;  %v1455_v58 = vadd.f32 %v1454_v51, %v2694_v1 }
 0xab7   :  { %v1466_v55 = vadd.f32 %v2220_v52, %v2685_v54  ;;  %v1457_v57 = vpop.f32.mrb[95].mxu0 }
 0xab8   :  { %v1458_v59 = vadd.f32 %v1457_v57, %v2691_v63 }
 0xab9   :  { %v1476_v60 = vpack.c.bf16 %v1466_v55, %v1463_v53  ;;  %2232 = vmatpush3.bf16.msra.mxu0 %v1474_v45  ;;  %2306 = vmatpush3.bf16.msra.mxu1 %v1474_v45 }
 0xaba   :  { %v1475_v61 = vpack.c.bf16 %v1458_v59, %v1455_v58 }
 0xabc   :  { %2233 = vmatprep.subr.bf16.mxu0 %v1475_v61  ;;  %2299 = vmatprep.subr.bf16.mxu1 %v1475_v61 }
 0xabd   :  { %2234 = vmatpush3.bf16.msra.mxu0 %v1475_v61  ;;  %2307 = vmatpush3.bf16.msra.mxu1 %v1475_v61 }
 0xabe   :  { %2235 = vmatprep.subr.bf16.mxu0 %v1476_v60  ;;  %2300 = vmatprep.subr.bf16.mxu1 %v1476_v60 }
 0xac1   :  { %2236 = vmatpush3.bf16.msra.mxu0 %v1476_v60  ;;  %2308 = vmatpush3.bf16.msra.mxu1 %v1476_v60 }
 0xac4   :  { %2238 = vmatmul.mubr.bf16.vlgmr.msra.gmra.mrb[96].mxu0 %v2868_v62  ;;  %2242 = vmatmul.mubr.bf16.vlgmr.msra.gmra.mrb[80].mxu1 %v2871_v4 }
 0xac5   :  { %2245 = vmatprep.mubr.bf16.mxu1 %v2874_v6 }
 0xacc   :  { %2246 = vmatmul.mubr.bf16.gmra.mrb[84].mxu1 %v2877_v8 }
 0xacd   :  { %2249 = vmatprep.mubr.bf16.mxu1 %v2880_v5 }
 0xad4   :  { %2250 = vmatmul.mubr.bf16.gmra.mrb[88].mxu1 %v2883_v7 }
 0xb97   :  { %v2239_v3 = vpop.f32.mrb[96].mxu0  ;;  %v2243_v16 = vpop.f32.mrb[80].mxu1 }
 0xb98   :  { %v1520_v19 = vadd.f32 %v2239_v3, %v2640_v18  ;;  %v1536_v0 = vadd.f32 %v2243_v16, %v2656_v33  ;;  %v1511_v2 = vpop.f32.mrb[97].mxu0  ;;  %v1527_v22 = vpop.f32.mrb[81].mxu1 }
 0xb99   :  { %v1512_v62 = vadd.f32 %v1511_v2, %v2646_v21  ;;  %v1528_v4 = vadd.f32 %v1527_v22, %v2662_v36  ;;  %v2240_v9 = vpop.f32.mrb[98].mxu0  ;;  %v2244_v6 = vpop.f32.mrb[82].mxu1 }
 0xb9a   :  { %1576 = vst [vmem:[#allocation5 + $0x10] sm:$0xff] %v1520_v19  ;;  %1580 = vst [vmem:[#allocation5 + $0x30] sm:$0xff] %v1536_v0  ;;  %v1523_v8 = vadd.f32 %v2240_v9, %v2637_v17  ;;  %v1539_v5 = vadd.f32 %v2244_v6, %v2653_v32  ;;  %v1514_v7 = vpop.f32.mrb[99].mxu0  ;;  %v1530_v23 = vpop.f32.mrb[83].mxu1 }
 0xb9b   :  { %1574 = vst [vmem:[#allocation5] sm:$0xff] %v1512_v62  ;;  %1578 = vst [vmem:[#allocation5 + $0x20] sm:$0xff] %v1528_v4  ;;  %v1515_v18 = vadd.f32 %v1514_v7, %v2643_v20  ;;  %v1531_v33 = vadd.f32 %v1530_v23, %v2659_v35 }
 0xb9c   :  { %1577 = vst [vmem:[#allocation5 + $0x18] sm:$0xff] %v1523_v8  ;;  %1581 = vst [vmem:[#allocation5 + $0x38] sm:$0xff] %v1539_v5 }
 0xb9d   :  { %1575 = vst [vmem:[#allocation5 + $0x8] sm:$0xff] %v1515_v18  ;;  %1579 = vst [vmem:[#allocation5 + $0x28] sm:$0xff] %v1531_v33 }
 0xb9f   :  { %v2247_v21 = vpop.f32.mrb[84].mxu1 }
 0xba0   :  { %v1552_v36 = vadd.f32 %v2247_v21, %v2672_v46  ;;  %v1543_v11 = vpop.f32.mrb[85].mxu1 }
 0xba1   :  { %v1544_v17 = vadd.f32 %v1543_v11, %v2678_v50  ;;  %v2248_v12 = vpop.f32.mrb[86].mxu1 }
 0xba2   :  { %1584 = vst [vmem:[#allocation5 + $0x50] sm:$0xff] %v1552_v36  ;;  %v1555_v32 = vadd.f32 %v2248_v12, %v2669_v44  ;;  %v1546_v24 = vpop.f32.mrb[87].mxu1 }
 0xba3   :  { %1582 = vst [vmem:[#allocation5 + $0x40] sm:$0xff] %v1544_v17  ;;  %v1547_v20 = vadd.f32 %v1546_v24, %v2675_v49 }
 0xba4   :  { %1585 = vst [vmem:[#allocation5 + $0x58] sm:$0xff] %v1555_v32 }
 0xba5   :  { %1583 = vst [vmem:[#allocation5 + $0x48] sm:$0xff] %v1547_v20 }
 0xba7   :  { %v2251_v35 = vpop.f32.mrb[88].mxu1 }
 0xba8   :  { %v1568_v13 = vadd.f32 %v2251_v35, %v2688_v56  ;;  %v1559_v25 = vpop.f32.mrb[89].mxu1 }
 0xba9   :  { %v1560_v46 = vadd.f32 %v1559_v25, %v2694_v1  ;;  %v2252_v14 = vpop.f32.mrb[90].mxu1 }
 0xbaa   :  { %1588 = vst [vmem:[#allocation5 + $0x70] sm:$0xff] %v1568_v13  ;;  %v1571_v50 = vadd.f32 %v2252_v14, %v2685_v54  ;;  %v1562_v15 = vpop.f32.mrb[91].mxu1 }
 0xbab   :  { %1586 = vst [vmem:[#allocation5 + $0x60] sm:$0xff] %v1560_v46  ;;  %v1563_v44 = vadd.f32 %v1562_v15, %v2691_v63 }
 0xbac   :  { %1589 = vst [vmem:[#allocation5 + $0x78] sm:$0xff] %v1571_v50 }
 0xbad   :  { %1587 = vst [vmem:[#allocation5 + $0x68] sm:$0xff] %v1563_v44 }
 0xbae   :  { %2364 = shalt.err (!%p2361_p12)
}
 0xbaf   :  { %s2365_s10 = scalar_lea.hbm %s2942_s6, 2048 }
 0xbb0   :  { %p2366_p13 = scmp.ne.s32.totalorder %s2942_s6, %s2365_s10  ;;  %p2369_p0 = scmp.lt.u32.totalorder %s2365_s10, %s2942_s6 }
 0xbb2   :  { %p2371_p1 = pnand %p2369_p0, %p2366_p13 }
 0xbb4   :  { %2374 = shalt.err (!%p2371_p1)
}
 0xbb5   :  { %s2383_s15 = smov 128   ;;  %s2384_s16 = smov 8  }
 0xbb6   :  { %1601 = dma.vmem_to_hbm [thread:$0]  %s1596_s4, 2048, %s2942_s6, [#allocation4], %s2383_s15, %s2383_s15, %s2384_s16  }
 0xbb7   :  { %2377 = dma.done.wait [#allocation4], 2048  }
 0xbb8   :  { %2378 = vsyncadd [#allocation4], 4294965248 }
 0xbb9   :  { %1605 = vsyncpa [#allocation3], 1 }
 0xbba   :  { %1606 = vsyncpa [#allocation4], 1 }

</bundles_post_ra>
